<compile_context>
chip_gen: v7x
topology: tpu7x:2x2x1
jax: 0.10.0
libtpu: 0.0.40
codegen_flags: <defaults>
</compile_context>

<pallas_src>
from functools import partial

import jax
import jax.numpy as jnp
from jax import lax
from jax.experimental import pallas as pl
from jax.experimental.pallas import tpu as pltpu

D = 768
DROP_P = 0.1
SCORE_SCALE = 1.0 / 0.0625  # == 16.0  (the .div(0.0625))


def _attn_kernel(x1_ref, x2_ref, wcat_ref, bqk_ref, u_ref, o_ref):
    # kv = x1 @ [W_qk | W_v]  -- single bf16 weight stream, f32 accumulation on the MXU.
    kv = jnp.dot(x1_ref[...], wcat_ref[...],
                 preferred_element_type=jnp.float32)          # (B, 2D) f32
    k = kv[:, :D] + bqk_ref[...]                              # (B, D) f32, bias bcast over rows
    v = kv[:, D:]                                             # (B, D) f32

    # scores = x2 @ k^T  (contract the feature dims of both -> no explicit transpose)
    scores = lax.dot_general(
        x2_ref[...], k.astype(jnp.bfloat16),
        (((1,), (1,)), ((), ())),
        preferred_element_type=jnp.float32)                   # (B, B) f32
    scores = scores * jnp.float32(SCORE_SCALE)

    # softmax over the last dim (f32)
    m = jnp.max(scores, axis=-1, keepdims=True)
    e = jnp.exp(scores - m)
    p = e / jnp.sum(e, axis=-1, keepdims=True)

    # dropout(p=0.1, training=True): keep with prob 1-p, scale kept values by 1/(1-p).
    keep = u_ref[...] >= jnp.float32(DROP_P)
    p = jnp.where(keep, p * jnp.float32(1.0 / (1.0 - DROP_P)), jnp.float32(0.0))

    # out = p @ v   (tiny K=B matmul -> keep f32 for accuracy; cost is noise)
    o_ref[...] = jnp.dot(p, v, preferred_element_type=jnp.float32)


def prepare_params(w_qk_torch, b_qk, w_v_torch):
    """One-time parameter packing (do NOT call per step).

    w_qk_torch, w_v_torch: PyTorch nn.Linear layout (out_features, in_features).
    Returns:
      w_cat: (D, 2D) bf16 packed [W_qk^T | W_v^T]  (in_features, out_features)
      b_qk : (1, D) f32
    """
    w_qk_io = jnp.asarray(w_qk_torch, jnp.float32).T          # (in, out)
    w_v_io = jnp.asarray(w_v_torch, jnp.float32).T            # (in, out)
    w_cat = jnp.concatenate([w_qk_io, w_v_io], axis=1).astype(jnp.bfloat16)  # (D, 2D)
    b = jnp.asarray(b_qk, jnp.float32).reshape(1, D)
    return w_cat, b


@partial(jax.jit, static_argnames=())
def model_forward(x1, x2, w_cat, b_qk, key):
    """x1: (B, D) f32, x2: (B, 1, D) f32, w_cat: (D, 2D) bf16 -> (B, 1, D) f32."""
    B = x1.shape[0]

    # bf16 activations (tiny, ~6 KB); weights are already packed bf16.
    x1_bf = x1.astype(jnp.bfloat16)
    x2_bf = x2.reshape(B, D).astype(jnp.bfloat16)

    # Dropout randomness at the scores shape, generated inside the jit.
    u = jax.random.uniform(key, (B, B), dtype=jnp.float32)

    # Kernel is pure weight-DMA bound; give XLA an accurate cost so it can overlap.
    flops = 2 * B * D * (2 * D) + 2 * B * B * D * 2            # kv matmul + scores + p@v
    bytes_accessed = (D * 2 * D) * 2 + (2 * B * D) * 2 + D * 4 + B * B * 4 + B * D * 4
    ce = pl.CostEstimate(flops=flops, transcendentals=B * B,
                         bytes_accessed=bytes_accessed)

    vmem = pl.BlockSpec(memory_space=pltpu.MemorySpace.VMEM)
    out2d = pl.pallas_call(
        _attn_kernel,
        out_shape=jax.ShapeDtypeStruct((B, D), jnp.float32),
        in_specs=[
            vmem,   # x1 (bf16)
            vmem,   # x2 squeezed (bf16)
            vmem,   # packed weights [W_qk | W_v] (bf16)
            vmem,   # qk bias (f32)
            vmem,   # dropout uniforms (f32)
        ],
        out_specs=vmem,
        cost_estimate=ce,
    )(x1_bf, x2_bf, w_cat, b_qk, u)
    return out2d.reshape(B, 1, D)


if __name__ == "__main__":
    key = jax.random.PRNGKey(0)
    k_x1, k_x2, k_wqk, k_bqk, k_wv, k_drop = jax.random.split(key, 6)

    B = 2
    x1 = jax.random.normal(k_x1, (B, D), dtype=jnp.float32)
    x2 = jax.random.normal(k_x2, (B, 1, D), dtype=jnp.float32)

    # Deterministic parameter init in PyTorch nn.Linear layout (out_features, in_features),
    # scale U(-1/sqrt(fan_in), 1/sqrt(fan_in)).
    bound = 1.0 / (D ** 0.5)
    w_qk_torch = jax.random.uniform(k_wqk, (D, D), jnp.float32, -bound, bound)  # (out, in)
    b_qk = jax.random.uniform(k_bqk, (1, D), jnp.float32, -bound, bound)
    w_v_torch = jax.random.uniform(k_wv, (D, D), jnp.float32, -bound, bound)    # (out, in)

    # One-time packing (outside the per-call path / jit).
    w_cat, b_f32 = prepare_params(w_qk_torch, b_qk, w_v_torch)
    w_cat = jax.block_until_ready(w_cat)

    out = model_forward(x1, x2, w_cat, b_f32, k_drop)
    jax.block_until_ready(out)
    assert out.shape == (B, 1, D) and out.dtype == jnp.float32
    assert bool(jnp.all(jnp.isfinite(out)))
    print("KERNEL_OK")
</pallas_src>

<mosaic_0001>
module attributes {stable_mosaic.version = 11 : i64} {
  func.func @_attn_kernel(%arg0: memref<2x768xbf16, #tpu.memory_space<vmem>>, %arg1: memref<2x768xbf16, #tpu.memory_space<vmem>>, %arg2: memref<768x1536xbf16, #tpu.memory_space<vmem>>, %arg3: memref<1x768xf32, #tpu.memory_space<vmem>>, %arg4: memref<2x2xf32, #tpu.memory_space<vmem>>, %arg5: memref<2x768xf32, #tpu.memory_space<vmem>>) attributes {dimension_semantics = [], scalar_prefetch = 0 : i64, scratch_operands = 0 : i64, tpu.core_type = #tpu.core_type<tc>} {
    %c0 = arith.constant 0 : index
    %c0_0 = arith.constant 0 : index
    %0 = vector.load %arg0[%c0, %c0_0] : memref<2x768xbf16, #tpu.memory_space<vmem>>, vector<2x768xbf16>
    %c0_1 = arith.constant 0 : index
    %c0_2 = arith.constant 0 : index
    %1 = vector.load %arg2[%c0_1, %c0_2] : memref<768x1536xbf16, #tpu.memory_space<vmem>>, vector<768x1536xbf16>
    %cst = arith.constant dense<0.000000e+00> : vector<2x1536xf32>
    %2 = tpu.matmul %0, %1, %cst {dimension_numbers = #tpu.dot_dimension_numbers<[1], [0], [0], [1], [0, 0, 1, 1], [], []>} : vector<2x768xbf16>, vector<768x1536xbf16>, vector<2x1536xf32> -> vector<2x1536xf32>
    %3 = vector.extract_strided_slice %2 {offsets = [0, 0], sizes = [2, 768], strides = [1, 1]} : vector<2x1536xf32> to vector<2x768xf32>
    %c0_3 = arith.constant 0 : index
    %c0_4 = arith.constant 0 : index
    %4 = vector.load %arg3[%c0_3, %c0_4] : memref<1x768xf32, #tpu.memory_space<vmem>>, vector<1x768xf32>
    %5 = vector.broadcast %4 : vector<1x768xf32> to vector<2x768xf32>
    %6 = arith.addf %3, %5 : vector<2x768xf32>
    %7 = vector.extract_strided_slice %2 {offsets = [0, 768], sizes = [2, 768], strides = [1, 1]} : vector<2x1536xf32> to vector<2x768xf32>
    %c0_5 = arith.constant 0 : index
    %c0_6 = arith.constant 0 : index
    %8 = vector.load %arg1[%c0_5, %c0_6] : memref<2x768xbf16, #tpu.memory_space<vmem>>, vector<2x768xbf16>
    %9 = arith.truncf %6 : vector<2x768xf32> to vector<2x768xbf16>
    %cst_7 = arith.constant dense<0.000000e+00> : vector<2x2xf32>
    %10 = tpu.matmul %8, %9, %cst_7 {dimension_numbers = #tpu.dot_dimension_numbers<[1], [1], [0], [0], [0, 0, 1, 0], [], []>} : vector<2x768xbf16>, vector<2x768xbf16>, vector<2x2xf32> -> vector<2x2xf32>
    %cst_8 = arith.constant 1.600000e+01 : f32
    %11 = vector.broadcast %cst_8 : f32 to vector<2x2xf32>
    %12 = arith.mulf %10, %11 : vector<2x2xf32>
    %cst_9 = arith.constant dense<0xFF800000> : vector<2xf32>
    %13 = vector.multi_reduction <maximumf>, %12, %cst_9 [1] : vector<2x2xf32> to vector<2xf32>
    %14 = vector.shape_cast %13 : vector<2xf32> to vector<2x1xf32>
    %15 = vector.broadcast %14 : vector<2x1xf32> to vector<2x2xf32>
    %16 = arith.subf %12, %15 : vector<2x2xf32>
    %17 = math.exp %16 : vector<2x2xf32>
    %cst_10 = arith.constant dense<0.000000e+00> : vector<2xf32>
    %18 = vector.multi_reduction <add>, %17, %cst_10 [1] : vector<2x2xf32> to vector<2xf32>
    %19 = vector.shape_cast %18 : vector<2xf32> to vector<2x1xf32>
    %20 = vector.broadcast %19 : vector<2x1xf32> to vector<2x2xf32>
    %21 = arith.divf %17, %20 : vector<2x2xf32>
    %c0_11 = arith.constant 0 : index
    %c0_12 = arith.constant 0 : index
    %22 = vector.load %arg4[%c0_11, %c0_12] : memref<2x2xf32, #tpu.memory_space<vmem>>, vector<2x2xf32>
    %cst_13 = arith.constant 1.000000e-01 : f32
    %23 = vector.broadcast %cst_13 : f32 to vector<2x2xf32>
    %24 = arith.cmpf oge, %22, %23 : vector<2x2xf32>
    %cst_14 = arith.constant 1.11111116 : f32
    %25 = vector.broadcast %cst_14 : f32 to vector<2x2xf32>
    %26 = arith.mulf %21, %25 : vector<2x2xf32>
    %cst_15 = arith.constant 0.000000e+00 : f32
    %27 = vector.broadcast %cst_15 : f32 to vector<2x2xf32>
    %28 = arith.select %24, %26, %27 : vector<2x2xi1>, vector<2x2xf32>
    %cst_16 = arith.constant dense<0.000000e+00> : vector<2x768xf32>
    %29 = tpu.matmul %28, %7, %cst_16 {dimension_numbers = #tpu.dot_dimension_numbers<[1], [0], [0], [1], [0, 0, 1, 1], [], []>} : vector<2x2xf32>, vector<2x768xf32>, vector<2x768xf32> -> vector<2x768xf32>
    %c0_17 = arith.constant 0 : index
    %c0_18 = arith.constant 0 : index
    %30 = vector.load %arg5[%c0_17, %c0_18] : memref<2x768xf32, #tpu.memory_space<vmem>>, vector<2x768xf32>
    tpu.vector_store %arg5[%c0_17, %c0_18], %29 {strides = array<i32>} : memref<2x768xf32, #tpu.memory_space<vmem>>, vector<2x768xf32>,
    return
  }
}

</mosaic_0001>

<bundles_post_ra>
// kernel: model_forward.1
= control target key start
LH: loop header
LB: loop body
LE: loop exit
PB: predicated region body
PF: predicated region fallthrough
CT: control target
= control target key end

     0   :  { %10 = vsyncpa [#allocation3], 0  ;;  %s6573_s0 = inlined_call_operand.vmem [shape: bf16[2,768], index: 0, kind: input, shape index: {}]   ;;  %s6574_s1 = inlined_call_operand.vmem [shape: bf16[2,768], index: 1, kind: input, shape index: {}]   ;;  %s6575_s2 = inlined_call_operand.hbm [shape: bf16[768,1536], index: 2, kind: input, shape index: {}]   ;;  %s6576_s3 = inlined_call_operand.hbm [shape: f32[1,768], index: 3, kind: input, shape index: {}]   ;;  %s6577_s4 = inlined_call_operand.vmem [shape: f32[2,2], index: 4, kind: input, shape index: {}]   ;;  %s6578_s5 = inlined_call_operand.vmem [shape: f32[2,768], index: 5, kind: output, shape index: {}]  }
   0x1   :  { %11 = vsyncpa [#allocation5], 0  ;;  %s6349_s18 = smov [#allocation2]   ;;  %s6301_s22 = scalar_lea.hbm %s6575_s2, 73728 }
   0x2   :  { %s21_s19 = sshll.u32 %s6349_s18, 4  ;;  %p6302_p0 = scmp.ne.s32.totalorder %s6575_s2, %s6301_s22  ;;  %s22_s19 = int_to_ptr.vmem [resolvable:$true] %s21_s19 }
   0x3   :  { %p6305_p1 = scmp.lt.u32.totalorder %s6301_s22, %s6575_s2 }
   0x5   :  { %p6307_p2 = pnand %p6305_p1, %p6302_p0 }
   0x7   :  { %6310 = shalt.err (!%p6307_p2)
}
   0x8   :  { %s6311_s27 = scalar_lea.vmem %s22_s19, 73728  ;;  %p6316_p4 = scmp.lt.s32.totalorder %s22_s19, %s22_s19 }
   0x9   :  { %p6312_p3 = scmp.ne.s32.totalorder %s22_s19, %s6311_s27  ;;  %p6317_p5 = scmp.lt.s32.totalorder %s6311_s27, %s6311_s27 }
   0xb   :  { %p6318_p6 = por %p6317_p5, %p6316_p4 }
   0xd   :  { %p6319_p7 = pnand %p6318_p6, %p6312_p3 }
   0xf   :  { %6322 = shalt.err (!%p6319_p7)
}
  0x10   :  { %s6350_s28 = smov 768   ;;  %s6351_s29 = smov 48  }
  0x11   :  { %27 = dma.hbm_to_vmem [thread:$0]  %s6575_s2, 73728, %s22_s19, [#allocation3], %s6350_s28, %s6350_s28, %s6351_s29  }
  0x12   :  { %s6352_s7 = smov [#allocation4]   ;;  %s6323_s11 = scalar_lea.hbm %s6576_s3, 96 }
  0x13   :  { %s34_s8 = sshll.u32 %s6352_s7, 4  ;;  %p6324_p8 = scmp.ne.s32.totalorder %s6576_s3, %s6323_s11  ;;  %s35_s8 = int_to_ptr.vmem [resolvable:$true] %s34_s8 }
  0x14   :  { %p6327_p9 = scmp.lt.u32.totalorder %s6323_s11, %s6576_s3 }
  0x16   :  { %p6329_p10 = pnand %p6327_p9, %p6324_p8 }
  0x18   :  { %6332 = shalt.err (!%p6329_p10)
}
  0x19   :  { %s6333_s16 = scalar_lea.vmem %s35_s8, 96  ;;  %p6338_p12 = scmp.lt.s32.totalorder %s35_s8, %s35_s8 }
  0x1a   :  { %p6334_p11 = scmp.ne.s32.totalorder %s35_s8, %s6333_s16  ;;  %p6339_p13 = scmp.lt.s32.totalorder %s6333_s16, %s6333_s16 }
  0x1c   :  { %p6340_p0 = por %p6339_p13, %p6338_p12 }
  0x1e   :  { %p6341_p1 = pnand %p6340_p0, %p6334_p11 }
  0x20   :  { %6344 = shalt.err (!%p6341_p1)
}
  0x21   :  { %37 = dma.hbm_to_vmem [thread:$0]  %s6576_s3, 96, %s35_s8, [#allocation5]  }
  0x22   :  { %6345 = dma.done.wait [#allocation3], 73728  }
  0x23   :  { %6346 = vsyncadd [#allocation3], 4294893568 }
  0x24   :  { %6347 = dma.done.wait [#allocation5], 96  }
  0x25   :  { %6348 = vsyncadd [#allocation5], 4294967200  ;;  %v5431_v0 = vld [vmem:[#allocation2 + $0x4] ss:$48 sps:$4 sm:$0xff]   ;;  %v5433_v1 = vld [vmem:[#allocation2 + $0xc] ss:$48 sps:$4 sm:$0xff]   ;;  %v629_v38 = vlaneseq }
  0x26   :  { %3558 = vmatprep.subr.bf16.mxu0 %v5431_v0  ;;  %v5435_v2 = vld [vmem:[#allocation2] ss:$48 sps:$4 sm:$0xff]   ;;  %v5436_v3 = vld [vmem:[#allocation2 + $0x8] ss:$48 sps:$4 sm:$0xff]   ;;  %3681 = vmatprep.subr.bf16.mxu1 %v5433_v1  ;;  %v5437_v4 = vld [vmem:[#allocation2 + $0x64] ss:$48 sps:$4 sm:$0xff]  }
  0x27   :  { %3559 = vmatpush1.bf16.msra.mxu0 %v5435_v2  ;;  %3682 = vmatpush1.bf16.msra.mxu1 %v5436_v3  ;;  %v5439_v5 = vld [vmem:[#allocation2 + $0x6c] ss:$48 sps:$4 sm:$0xff]   ;;  %v5441_v6 = vld [vmem:[#allocation2 + $0x60] ss:$48 sps:$4 sm:$0xff]   ;;  %v5442_v7 = vld [vmem:[#allocation2 + $0x68] ss:$48 sps:$4 sm:$0xff]  }
  0x28   :  { %3560 = vmatprep.subr.bf16.mxu0 %v5437_v4  ;;  %3683 = vmatprep.subr.bf16.mxu1 %v5439_v5  ;;  %v5443_v8 = vld [vmem:[#allocation2 + $0xc4] ss:$48 sps:$4 sm:$0xff]   ;;  %v5445_v9 = vld [vmem:[#allocation2 + $0xcc] ss:$48 sps:$4 sm:$0xff]   ;;  %v5447_v10 = vld [vmem:[#allocation2 + $0xc0] ss:$48 sps:$4 sm:$0xff]  }
  0x29   :  { %v5448_v11 = vld [vmem:[#allocation2 + $0xc8] ss:$48 sps:$4 sm:$0xff]   ;;  %v5449_v12 = vld [vmem:[#allocation2 + $0x124] ss:$48 sps:$4 sm:$0xff]   ;;  %v5451_v13 = vld [vmem:[#allocation2 + $0x12c] ss:$48 sps:$4 sm:$0xff]  }
  0x2a   :  { %v5453_v14 = vld [vmem:[#allocation2 + $0x120] ss:$48 sps:$4 sm:$0xff]   ;;  %v5454_v15 = vld [vmem:[#allocation2 + $0x128] ss:$48 sps:$4 sm:$0xff]   ;;  %v5455_v16 = vld [vmem:[#allocation2 + $0x184] ss:$48 sps:$4 sm:$0xff]  }
  0x2b   :  { %3561 = vmatpush1.bf16.msra.mxu0 %v5441_v6  ;;  %3684 = vmatpush1.bf16.msra.mxu1 %v5442_v7  ;;  %v5457_v17 = vld [vmem:[#allocation2 + $0x18c] ss:$48 sps:$4 sm:$0xff]   ;;  %v5459_v18 = vld [vmem:[#allocation2 + $0x180] ss:$48 sps:$4 sm:$0xff]   ;;  %v5460_v19 = vld [vmem:[#allocation2 + $0x188] ss:$48 sps:$4 sm:$0xff]  }
  0x2c   :  { %3562 = vmatprep.subr.bf16.mxu0 %v5443_v8  ;;  %3685 = vmatprep.subr.bf16.mxu1 %v5445_v9  ;;  %v5461_v20 = vld [vmem:[#allocation2 + $0x1e4] ss:$48 sps:$4 sm:$0xff]   ;;  %v5463_v21 = vld [vmem:[#allocation2 + $0x1ec] ss:$48 sps:$4 sm:$0xff]   ;;  %v5465_v22 = vld [vmem:[#allocation2 + $0x1e0] ss:$48 sps:$4 sm:$0xff]  }
  0x2d   :  { %v5466_v23 = vld [vmem:[#allocation2 + $0x1e8] ss:$48 sps:$4 sm:$0xff]   ;;  %v5467_v24 = vld [vmem:[#allocation2 + $0x244] ss:$48 sps:$4 sm:$0xff]   ;;  %v5469_v25 = vld [vmem:[#allocation2 + $0x24c] ss:$48 sps:$4 sm:$0xff]  }
  0x2e   :  { %v5471_v26 = vld [vmem:[#allocation2 + $0x240] ss:$48 sps:$4 sm:$0xff]   ;;  %v5472_v27 = vld [vmem:[#allocation2 + $0x248] ss:$48 sps:$4 sm:$0xff]   ;;  %v5473_v28 = vld [vmem:[#allocation2 + $0x2a4] ss:$48 sps:$4 sm:$0xff]  }
  0x2f   :  { %3563 = vmatpush1.bf16.msra.mxu0 %v5447_v10  ;;  %3686 = vmatpush1.bf16.msra.mxu1 %v5448_v11  ;;  %v5475_v29 = vld [vmem:[#allocation2 + $0x2ac] ss:$48 sps:$4 sm:$0xff]   ;;  %v5477_v30 = vld [vmem:[#allocation2 + $0x2a0] ss:$48 sps:$4 sm:$0xff]   ;;  %v5478_v31 = vld [vmem:[#allocation2 + $0x2a8] ss:$48 sps:$4 sm:$0xff]  }
  0x30   :  { %3564 = vmatprep.subr.bf16.mxu0 %v5449_v12  ;;  %3687 = vmatprep.subr.bf16.mxu1 %v5451_v13  ;;  %v5479_v32 = vld [vmem:[#allocation2 + $0x304] ss:$48 sps:$4 sm:$0xff]   ;;  %v5481_v33 = vld [vmem:[#allocation2 + $0x30c] ss:$48 sps:$4 sm:$0xff]   ;;  %v5483_v34 = vld [vmem:[#allocation2 + $0x300] ss:$48 sps:$4 sm:$0xff]  }
  0x31   :  { %v5484_v35 = vld [vmem:[#allocation2 + $0x308] ss:$48 sps:$4 sm:$0xff]   ;;  %v6353_v36 = vmov 1966171168   ;;  %v5485_v39 = vld [vmem:[#allocation2 + $0x364] ss:$48 sps:$4 sm:$0xff]  }
  0x32   :  { %v627_v37 = vunpack.c.l.s4 %v6353_v36  ;;  %v5487_v40 = vld [vmem:[#allocation2 + $0x36c] ss:$48 sps:$4 sm:$0xff]   ;;  %v5489_v41 = vld [vmem:[#allocation2 + $0x360] ss:$48 sps:$4 sm:$0xff]   ;;  %v6410_v43 = vshrl.u32 %v629_v38, 7  ;;  %vm4536_vm0 = vcmask 1041408  }
  0x33   :  { %3565 = vmatpush1.bf16.msra.mxu0 %v5453_v14  ;;  %3688 = vmatpush1.bf16.msra.mxu1 %v5454_v15  ;;  %v5490_v44 = vld [vmem:[#allocation2 + $0x368] ss:$48 sps:$4 sm:$0xff]   ;;  %v5491_v45 = vld [vmem:[#allocation2 + $0x3c4] ss:$48 sps:$4 sm:$0xff]   ;;  %v5493_v46 = vld [vmem:[#allocation2 + $0x3cc] ss:$48 sps:$4 sm:$0xff]  }
  0x34   :  { %3566 = vmatprep.subr.bf16.mxu0 %v5455_v16  ;;  %3689 = vmatprep.subr.bf16.mxu1 %v5457_v17  ;;  %v628_v42 = vunpack.c.0.s8 %v627_v37  ;;  %v5495_v47 = vld [vmem:[#allocation2 + $0x3c0] ss:$48 sps:$4 sm:$0xff]   ;;  %v5496_v48 = vld [vmem:[#allocation2 + $0x3c8] ss:$48 sps:$4 sm:$0xff]   ;;  %v5497_v50 = vld [vmem:[#allocation2 + $0x424] ss:$48 sps:$4 sm:$0xff]  }
  0x35   :  { %v5499_v51 = vld [vmem:[#allocation2 + $0x42c] ss:$48 sps:$4 sm:$0xff]   ;;  %v47_v52 = vld [vmem:[%s6573_s0] sm:$0x3f]  ;;  %v5502_v55 = vld [vmem:[#allocation2 + $0x428] ss:$48 sps:$4 sm:$0xff]  }
  0x36   :  { %v6413_v49 = vsub.s32 %v628_v42, %v6410_v43  ;;  %v5501_v53 = vld [vmem:[#allocation2 + $0x420] ss:$48 sps:$4 sm:$0xff]   ;;  %v5503_v56 = vld [vmem:[#allocation2 + $0x484] ss:$48 sps:$4 sm:$0xff]   ;;  %v5505_v57 = vld [vmem:[#allocation2 + $0x48c] ss:$48 sps:$4 sm:$0xff]   ;;  %v625_v4 = vcombine.high %v47_v52, %v47_v52 }
  0x37   :  { %3567 = vmatpush1.bf16.msra.mxu0 %v5459_v18  ;;  %3690 = vmatpush1.bf16.msra.mxu1 %v5460_v19  ;;  %v5507_v59 = vld [vmem:[#allocation2 + $0x480] ss:$48 sps:$4 sm:$0xff]   ;;  %v5508_v61 = vld [vmem:[#allocation2 + $0x488] ss:$48 sps:$4 sm:$0xff]   ;;  %v5509_v62 = vld [vmem:[#allocation2 + $0x4e4] ss:$48 sps:$4 sm:$0xff]  }
  0x38   :  { %3568 = vmatprep.subr.bf16.mxu0 %v5461_v20  ;;  %3691 = vmatprep.subr.bf16.mxu1 %v5463_v21  ;;  %v632_v54 = vrot.slane %v47_v52, %v6413_v49  ;;  %v5511_v63 = vld [vmem:[#allocation2 + $0x4ec] ss:$48 sps:$4 sm:$0xff]   ;;  %v5513_v0 = vld [vmem:[#allocation2 + $0x4e0] ss:$48 sps:$4 sm:$0xff]   ;;  %v5514_v1 = vld [vmem:[#allocation2 + $0x4e8] ss:$48 sps:$4 sm:$0xff]   ;;  %v6425_v9 = vrot.slane %v625_v4, %v6413_v49 }
  0x39   :  { %v5515_v2 = vld [vmem:[#allocation2 + $0x544] ss:$48 sps:$4 sm:$0xff]   ;;  %v5517_v3 = vld [vmem:[#allocation2 + $0x54c] ss:$48 sps:$4 sm:$0xff]   ;;  %v5519_v5 = vld [vmem:[#allocation2 + $0x540] ss:$48 sps:$4 sm:$0xff]  }
  0x3a   :  { %v640_v58 = vcombine.high %v632_v54, %v632_v54  ;;  %v5520_v6 = vld [vmem:[#allocation2 + $0x548] ss:$48 sps:$4 sm:$0xff]   ;;  %v5521_v7 = vld [vmem:[#allocation2 + $0x5a4] ss:$48 sps:$4 sm:$0xff]   ;;  %v5523_v8 = vld [vmem:[#allocation2 + $0x5ac] ss:$48 sps:$4 sm:$0xff]   ;;  %v641_v14 = vcombine.high %v6425_v9, %v6425_v9  ;;  %v6430_v15 = vrot.slane %v632_v54, %v6413_v49 }
  0x3b   :  { %3569 = vmatpush1.bf16.msra.mxu0 %v5465_v22  ;;  %3692 = vmatpush1.bf16.msra.mxu1 %v5466_v23  ;;  %v5525_v10 = vld [vmem:[#allocation2 + $0x5a0] ss:$48 sps:$4 sm:$0xff]   ;;  %v5526_v11 = vld [vmem:[#allocation2 + $0x5a8] ss:$48 sps:$4 sm:$0xff]   ;;  %v5529_v12 = vld [vmem:[#allocation2 + $0x604] ss:$48 sps:$4 sm:$0xff]  }
  0x3c   :  { %3570 = vmatprep.subr.bf16.mxu0 %v5467_v24  ;;  %3693 = vmatprep.subr.bf16.mxu1 %v5469_v25  ;;  %v6420_v60 = vrot.slane %v640_v58, %v6413_v49  ;;  %v5532_v13 = vld [vmem:[#allocation2 + $0xc0c] ss:$48 sps:$4 sm:$0xff]   ;;  %v5527_v16 = vld [vmem:[#allocation2 + $0x600] ss:$48 sps:$4 sm:$0xff]   ;;  %v5530_v17 = vld [vmem:[#allocation2 + $0xc08] ss:$48 sps:$4 sm:$0xff]   ;;  %v6437_v21 = vrot.slane %v641_v14, %v6413_v49 }
  0x3d   :  { %v5535_v18 = vld [vmem:[#allocation2 + $0x664] ss:$48 sps:$4 sm:$0xff]   ;;  %v5538_v19 = vld [vmem:[#allocation2 + $0xc6c] ss:$48 sps:$4 sm:$0xff]   ;;  %v5533_v22 = vld [vmem:[#allocation2 + $0x660] ss:$48 sps:$4 sm:$0xff]  }
  0x3e   :  { %3590 = vmatprep.mubr.bf16.mxu0 %v6420_v60  ;;  %3713 = vmatprep.mubr.bf16.mxu1 %v6420_v60  ;;  %v6434_v20 = vcombine.high %v6420_v60, %v6420_v60  ;;  %v5536_v23 = vld [vmem:[#allocation2 + $0xc68] ss:$48 sps:$4 sm:$0xff]   ;;  %v5541_v24 = vld [vmem:[#allocation2 + $0x6c4] ss:$48 sps:$4 sm:$0xff]   ;;  %v5544_v25 = vld [vmem:[#allocation2 + $0xccc] ss:$48 sps:$4 sm:$0xff]  }
  0x3f   :  { %3571 = vmatpush1.bf16.msra.mxu0 %v5471_v26  ;;  %3694 = vmatpush1.bf16.msra.mxu1 %v5472_v27  ;;  %v5539_v26 = vld [vmem:[#allocation2 + $0x6c0] ss:$48 sps:$4 sm:$0xff]   ;;  %v5542_v27 = vld [vmem:[#allocation2 + $0xcc8] ss:$48 sps:$4 sm:$0xff]   ;;  %v5559_v36 = vld [vmem:[#allocation2 + $0x7e4] ss:$48 sps:$4 sm:$0xff]  }
  0x40   :  { %3572 = vmatprep.subr.bf16.mxu0 %v5473_v28  ;;  %3695 = vmatprep.subr.bf16.mxu1 %v5475_v29  ;;  %v5547_v28 = vld [vmem:[#allocation2 + $0x724] ss:$48 sps:$4 sm:$0xff]   ;;  %v5550_v29 = vld [vmem:[#allocation2 + $0xd2c] ss:$48 sps:$4 sm:$0xff]   ;;  %v5557_v38 = vld [vmem:[#allocation2 + $0x7e0] ss:$48 sps:$4 sm:$0xff]  }
  0x41   :  { %v5562_v37 = vld [vmem:[#allocation2 + $0xdec] ss:$48 sps:$4 sm:$0xff]   ;;  %v5563_v42 = vld [vmem:[#allocation2 + $0x840] ss:$48 sps:$4 sm:$0xff]   ;;  %v5583_v54 = vld [vmem:[#allocation2 + $0x964] ss:$48 sps:$4 sm:$0xff]  }
  0x42   :  { %v5575_v52 = vld [vmem:[#allocation2 + $0x900] ss:$48 sps:$4 sm:$0xff]   ;;  %v5589_v58 = vld [vmem:[#allocation2 + $0x9c4] ss:$48 sps:$4 sm:$0xff]   ;;  %v5604_v4 = vld [vmem:[#allocation2 + $0x108c] ss:$48 sps:$4 sm:$0xff]  }
  0x43   :  { %3573 = vmatpush1.bf16.msra.mxu0 %v5477_v30  ;;  %3696 = vmatpush1.bf16.msra.mxu1 %v5478_v31  ;;  %v5545_v30 = vld [vmem:[#allocation2 + $0x720] ss:$48 sps:$4 sm:$0xff]   ;;  %v5548_v31 = vld [vmem:[#allocation2 + $0xd28] ss:$48 sps:$4 sm:$0xff]   ;;  %vm4516_vm1 = vcmask 9216   ;;  %vm4532_vm3 = vcmask 15360  }
  0x44   :  { %3574 = vmatprep.subr.bf16.mxu0 %v5479_v32  ;;  %3697 = vmatprep.subr.bf16.mxu1 %v5481_v33  ;;  %v5553_v32 = vld [vmem:[#allocation2 + $0x784] ss:$48 sps:$4 sm:$0xff]   ;;  %v5556_v33 = vld [vmem:[#allocation2 + $0xd8c] ss:$48 sps:$4 sm:$0xff]   ;;  %v5611_v14 = vld [vmem:[#allocation2 + $0xb40] ss:$48 sps:$4 sm:$0xff]  }
  0x47   :  { %3575 = vmatpush1.bf16.msra.mxu0 %v5483_v34  ;;  %3698 = vmatpush1.bf16.msra.mxu1 %v5484_v35  ;;  %v5551_v34 = vld [vmem:[#allocation2 + $0x780] ss:$48 sps:$4 sm:$0xff]   ;;  %v5554_v35 = vld [vmem:[#allocation2 + $0xd88] ss:$48 sps:$4 sm:$0xff]  }
  0x48   :  { %3576 = vmatprep.subr.bf16.mxu0 %v5485_v39  ;;  %3699 = vmatprep.subr.bf16.mxu1 %v5487_v40  ;;  %v5560_v39 = vld [vmem:[#allocation2 + $0xde8] ss:$48 sps:$4 sm:$0xff]   ;;  %v5565_v40 = vld [vmem:[#allocation2 + $0x844] ss:$48 sps:$4 sm:$0xff]  }
  0x4b   :  { %3577 = vmatpush1.bf16.msra.mxu0 %v5489_v41  ;;  %3700 = vmatpush1.bf16.msra.mxu1 %v5490_v44  ;;  %v5568_v41 = vld [vmem:[#allocation2 + $0xe4c] ss:$48 sps:$4 sm:$0xff]   ;;  %v5566_v44 = vld [vmem:[#allocation2 + $0xe48] ss:$48 sps:$4 sm:$0xff]  }
  0x4c   :  { %3578 = vmatprep.subr.bf16.mxu0 %v5491_v45  ;;  %3701 = vmatprep.subr.bf16.mxu1 %v5493_v46  ;;  %v5571_v45 = vld [vmem:[#allocation2 + $0x8a4] ss:$48 sps:$4 sm:$0xff]   ;;  %v5574_v46 = vld [vmem:[#allocation2 + $0xeac] ss:$48 sps:$4 sm:$0xff]  }
  0x4f   :  { %3579 = vmatpush1.bf16.msra.mxu0 %v5495_v47  ;;  %3702 = vmatpush1.bf16.msra.mxu1 %v5496_v48  ;;  %v5569_v47 = vld [vmem:[#allocation2 + $0x8a0] ss:$48 sps:$4 sm:$0xff]   ;;  %v5572_v48 = vld [vmem:[#allocation2 + $0xea8] ss:$48 sps:$4 sm:$0xff]  }
  0x50   :  { %3580 = vmatprep.subr.bf16.mxu0 %v5497_v50  ;;  %3703 = vmatprep.subr.bf16.mxu1 %v5499_v51  ;;  %v5577_v50 = vld [vmem:[#allocation2 + $0x904] ss:$48 sps:$4 sm:$0xff]   ;;  %v5580_v51 = vld [vmem:[#allocation2 + $0xf0c] ss:$48 sps:$4 sm:$0xff]  }
  0x53   :  { %3581 = vmatpush1.bf16.msra.mxu0 %v5501_v53  ;;  %3704 = vmatpush1.bf16.msra.mxu1 %v5502_v55  ;;  %v5578_v53 = vld [vmem:[#allocation2 + $0xf08] ss:$48 sps:$4 sm:$0xff]   ;;  %v5586_v55 = vld [vmem:[#allocation2 + $0xf6c] ss:$48 sps:$4 sm:$0xff]  }
  0x54   :  { %3582 = vmatprep.subr.bf16.mxu0 %v5503_v56  ;;  %3705 = vmatprep.subr.bf16.mxu1 %v5505_v57  ;;  %v5581_v56 = vld [vmem:[#allocation2 + $0x960] ss:$48 sps:$4 sm:$0xff]   ;;  %v5584_v57 = vld [vmem:[#allocation2 + $0xf68] ss:$48 sps:$4 sm:$0xff]  }
  0x57   :  { %3583 = vmatpush1.bf16.msra.mxu0 %v5507_v59  ;;  %3706 = vmatpush1.bf16.msra.mxu1 %v5508_v61  ;;  %v5592_v59 = vld [vmem:[#allocation2 + $0xfcc] ss:$48 sps:$4 sm:$0xff]   ;;  %v5587_v61 = vld [vmem:[#allocation2 + $0x9c0] ss:$48 sps:$4 sm:$0xff]  }
  0x58   :  { %3584 = vmatprep.subr.bf16.mxu0 %v5509_v62  ;;  %3707 = vmatprep.subr.bf16.mxu1 %v5511_v63  ;;  %v5590_v62 = vld [vmem:[#allocation2 + $0xfc8] ss:$48 sps:$4 sm:$0xff]   ;;  %v5595_v63 = vld [vmem:[#allocation2 + $0xa24] ss:$48 sps:$4 sm:$0xff]  }
  0x5b   :  { %3585 = vmatpush1.bf16.msra.mxu0 %v5513_v0  ;;  %3708 = vmatpush1.bf16.msra.mxu1 %v5514_v1  ;;  %v5598_v0 = vld [vmem:[#allocation2 + $0x102c] ss:$48 sps:$4 sm:$0xff]   ;;  %v5593_v1 = vld [vmem:[#allocation2 + $0xa20] ss:$48 sps:$4 sm:$0xff]  }
  0x5c   :  { %3586 = vmatprep.subr.bf16.mxu0 %v5515_v2  ;;  %3709 = vmatprep.subr.bf16.mxu1 %v5517_v3  ;;  %v5596_v2 = vld [vmem:[#allocation2 + $0x1028] ss:$48 sps:$4 sm:$0xff]   ;;  %v5601_v3 = vld [vmem:[#allocation2 + $0xa84] ss:$48 sps:$4 sm:$0xff]  }
  0x5f   :  { %3587 = vmatpush1.bf16.msra.mxu0 %v5519_v5  ;;  %3710 = vmatpush1.bf16.msra.mxu1 %v5520_v6  ;;  %v5599_v5 = vld [vmem:[#allocation2 + $0xa80] ss:$48 sps:$4 sm:$0xff]   ;;  %v5602_v6 = vld [vmem:[#allocation2 + $0x1088] ss:$48 sps:$4 sm:$0xff]  }
  0x60   :  { %3588 = vmatprep.subr.bf16.mxu0 %v5521_v7  ;;  %3711 = vmatprep.subr.bf16.mxu1 %v5523_v8  ;;  %v5607_v7 = vld [vmem:[#allocation2 + $0xae4] ss:$48 sps:$4 sm:$0xff]   ;;  %v5610_v8 = vld [vmem:[#allocation2 + $0x10ec] ss:$48 sps:$4 sm:$0xff]  }
  0x63   :  { %3589 = vmatpush1.bf16.msra.mxu0 %v5525_v10  ;;  %3712 = vmatpush1.bf16.msra.mxu1 %v5526_v11  ;;  %v5605_v10 = vld [vmem:[#allocation2 + $0xae0] ss:$48 sps:$4 sm:$0xff]   ;;  %v5608_v11 = vld [vmem:[#allocation2 + $0x10e8] ss:$48 sps:$4 sm:$0xff]  }
  0x64   :  { %3599 = vmatprep.subr.bf16.mxu0 %v5529_v12  ;;  %3763 = vmatprep.subr.bf16.mxu1 %v5532_v13  ;;  %v5613_v12 = vld [vmem:[#allocation2 + $0xb44] ss:$48 sps:$4 sm:$0xff]   ;;  %v5616_v13 = vld [vmem:[#allocation2 + $0x114c] ss:$48 sps:$4 sm:$0xff]  }
  0x66   :  { %3591 = vmatmul.mubr.bf16.vlgmr.msra.gmra.mrb[0].mxu0 %v6430_v15  ;;  %3714 = vmatmul.mubr.bf16.vlgmr.msra.gmra.mrb[0].mxu1 %v6430_v15 }
  0x67   :  { %3600 = vmatpush1.bf16.msra.mxu0 %v5527_v16  ;;  %3764 = vmatpush1.bf16.msra.mxu1 %v5530_v17  ;;  %v5614_v16 = vld [vmem:[#allocation2 + $0x1148] ss:$48 sps:$4 sm:$0xff]   ;;  %v5619_v17 = vld [vmem:[#allocation2 + $0xba4] ss:$48 sps:$4 sm:$0xff]  }
  0x68   :  { %3601 = vmatprep.subr.bf16.mxu0 %v5535_v18  ;;  %3765 = vmatprep.subr.bf16.mxu1 %v5538_v19  ;;  %v5622_v18 = vld [vmem:[#allocation2 + $0x11ac] ss:$48 sps:$4 sm:$0xff]   ;;  %v5617_v19 = vld [vmem:[#allocation2 + $0xba0] ss:$48 sps:$4 sm:$0xff]  }
  0x69   :  { %3631 = vmatprep.mubr.bf16.mxu0 %v6434_v20  ;;  %3795 = vmatprep.mubr.bf16.mxu1 %v6437_v21 }
  0x6b   :  { %3602 = vmatpush1.bf16.msra.mxu0 %v5533_v22  ;;  %3766 = vmatpush1.bf16.msra.mxu1 %v5536_v23  ;;  %v5620_v22 = vld [vmem:[#allocation2 + $0x11a8] ss:$48 sps:$4 sm:$0xff]   ;;  %v5625_v23 = vld [vmem:[#allocation2 + $0xc04] ss:$48 sps:$4 sm:$0xff]  }
  0x6c   :  { %3603 = vmatprep.subr.bf16.mxu0 %v5541_v24  ;;  %3767 = vmatprep.subr.bf16.mxu1 %v5544_v25  ;;  %v5629_v24 = vld [vmem:[#allocation2 + $0x614] ss:$48 sps:$4 sm:$0xff]   ;;  %v6445_v25 = vcombine.high %v6430_v15, %v6430_v15 }
  0x6f   :  { %3604 = vmatpush1.bf16.msra.mxu0 %v5539_v26  ;;  %3768 = vmatpush1.bf16.msra.mxu1 %v5542_v27  ;;  %v5623_v26 = vld [vmem:[#allocation2 + $0xc00] ss:$48 sps:$4 sm:$0xff]   ;;  %v6449_v27 = vrot.slane %v6425_v9, %v6413_v49  ;;  %v5641_v9 = vld [vmem:[#allocation2 + $0x6d4] ss:$48 sps:$4 sm:$0xff]  }
  0x70   :  { %3605 = vmatprep.subr.bf16.mxu0 %v5547_v28  ;;  %3769 = vmatprep.subr.bf16.mxu1 %v5550_v29  ;;  %v5627_v28 = vld [vmem:[#allocation2 + $0x610] ss:$48 sps:$4 sm:$0xff]   ;;  %v5632_v29 = vld [vmem:[#allocation2 + $0xc64] ss:$48 sps:$4 sm:$0xff]  }
  0x73   :  { %3606 = vmatpush1.bf16.msra.mxu0 %v5545_v30  ;;  %3770 = vmatpush1.bf16.msra.mxu1 %v5548_v31  ;;  %v5635_v30 = vld [vmem:[#allocation2 + $0x674] ss:$48 sps:$4 sm:$0xff]   ;;  %v5630_v31 = vld [vmem:[#allocation2 + $0xc60] ss:$48 sps:$4 sm:$0xff]  }
  0x74   :  { %3607 = vmatprep.subr.bf16.mxu0 %v5553_v32  ;;  %3771 = vmatprep.subr.bf16.mxu1 %v5556_v33  ;;  %v5633_v32 = vld [vmem:[#allocation2 + $0x670] ss:$48 sps:$4 sm:$0xff]   ;;  %v5638_v33 = vld [vmem:[#allocation2 + $0xcc4] ss:$48 sps:$4 sm:$0xff]  }
  0x77   :  { %3608 = vmatpush1.bf16.msra.mxu0 %v5551_v34  ;;  %3772 = vmatpush1.bf16.msra.mxu1 %v5554_v35  ;;  %v5636_v34 = vld [vmem:[#allocation2 + $0xcc0] ss:$48 sps:$4 sm:$0xff]  }
  0x78   :  { %3609 = vmatprep.subr.bf16.mxu0 %v5559_v36  ;;  %3773 = vmatprep.subr.bf16.mxu1 %v5562_v37  ;;  %v5639_v35 = vld [vmem:[#allocation2 + $0x6d0] ss:$48 sps:$4 sm:$0xff]   ;;  %v5644_v36 = vld [vmem:[#allocation2 + $0xd24] ss:$48 sps:$4 sm:$0xff]  }
  0x79   :  { %v5647_v37 = vld [vmem:[#allocation2 + $0x734] ss:$48 sps:$4 sm:$0xff]  }
  0x7b   :  { %3610 = vmatpush1.bf16.msra.mxu0 %v5557_v38  ;;  %3774 = vmatpush1.bf16.msra.mxu1 %v5560_v39  ;;  %v5642_v38 = vld [vmem:[#allocation2 + $0xd20] ss:$48 sps:$4 sm:$0xff]  }
  0x7c   :  { %3611 = vmatprep.subr.bf16.mxu0 %v5565_v40  ;;  %3775 = vmatprep.subr.bf16.mxu1 %v5568_v41  ;;  %v5645_v39 = vld [vmem:[#allocation2 + $0x730] ss:$48 sps:$4 sm:$0xff]   ;;  %v5650_v40 = vld [vmem:[#allocation2 + $0xd84] ss:$48 sps:$4 sm:$0xff]  }
  0x7d   :  { %v5653_v41 = vld [vmem:[#allocation2 + $0x794] ss:$48 sps:$4 sm:$0xff]  }
  0x7f   :  { %3612 = vmatpush1.bf16.msra.mxu0 %v5563_v42  ;;  %3776 = vmatpush1.bf16.msra.mxu1 %v5566_v44  ;;  %v5648_v42 = vld [vmem:[#allocation2 + $0xd80] ss:$48 sps:$4 sm:$0xff]  }
  0x80   :  { %3613 = vmatprep.subr.bf16.mxu0 %v5571_v45  ;;  %3777 = vmatprep.subr.bf16.mxu1 %v5574_v46  ;;  %v5651_v44 = vld [vmem:[#allocation2 + $0x790] ss:$48 sps:$4 sm:$0xff]   ;;  %v5656_v45 = vld [vmem:[#allocation2 + $0xde4] ss:$48 sps:$4 sm:$0xff]  }
  0x81   :  { %v5659_v46 = vld [vmem:[#allocation2 + $0x7f4] ss:$48 sps:$4 sm:$0xff]  }
  0x83   :  { %3614 = vmatpush1.bf16.msra.mxu0 %v5569_v47  ;;  %3778 = vmatpush1.bf16.msra.mxu1 %v5572_v48  ;;  %v5654_v47 = vld [vmem:[#allocation2 + $0xde0] ss:$48 sps:$4 sm:$0xff]  }
  0x84   :  { %3615 = vmatprep.subr.bf16.mxu0 %v5577_v50  ;;  %3779 = vmatprep.subr.bf16.mxu1 %v5580_v51  ;;  %v5657_v48 = vld [vmem:[#allocation2 + $0x7f0] ss:$48 sps:$4 sm:$0xff]   ;;  %v5662_v50 = vld [vmem:[#allocation2 + $0xe44] ss:$48 sps:$4 sm:$0xff]  }
  0x85   :  { %v5665_v51 = vld [vmem:[#allocation2 + $0x854] ss:$48 sps:$4 sm:$0xff]  }
  0x87   :  { %3616 = vmatpush1.bf16.msra.mxu0 %v5575_v52  ;;  %3780 = vmatpush1.bf16.msra.mxu1 %v5578_v53  ;;  %v5660_v52 = vld [vmem:[#allocation2 + $0xe40] ss:$48 sps:$4 sm:$0xff]  }
  0x88   :  { %3617 = vmatprep.subr.bf16.mxu0 %v5583_v54  ;;  %3781 = vmatprep.subr.bf16.mxu1 %v5586_v55  ;;  %v5663_v53 = vld [vmem:[#allocation2 + $0x850] ss:$48 sps:$4 sm:$0xff]   ;;  %v5668_v54 = vld [vmem:[#allocation2 + $0xea4] ss:$48 sps:$4 sm:$0xff]  }
  0x89   :  { %v5671_v55 = vld [vmem:[#allocation2 + $0x8b4] ss:$48 sps:$4 sm:$0xff]  }
  0x8b   :  { %3618 = vmatpush1.bf16.msra.mxu0 %v5581_v56  ;;  %3782 = vmatpush1.bf16.msra.mxu1 %v5584_v57  ;;  %v5666_v56 = vld [vmem:[#allocation2 + $0xea0] ss:$48 sps:$4 sm:$0xff]  }
  0x8c   :  { %3619 = vmatprep.subr.bf16.mxu0 %v5589_v58  ;;  %3783 = vmatprep.subr.bf16.mxu1 %v5592_v59  ;;  %v5669_v57 = vld [vmem:[#allocation2 + $0x8b0] ss:$48 sps:$4 sm:$0xff]   ;;  %v5674_v58 = vld [vmem:[#allocation2 + $0xf04] ss:$48 sps:$4 sm:$0xff]  }
  0x8d   :  { %v5677_v59 = vld [vmem:[#allocation2 + $0x914] ss:$48 sps:$4 sm:$0xff]  }
  0x8f   :  { %3620 = vmatpush1.bf16.msra.mxu0 %v5587_v61  ;;  %3784 = vmatpush1.bf16.msra.mxu1 %v5590_v62  ;;  %v5672_v61 = vld [vmem:[#allocation2 + $0xf00] ss:$48 sps:$4 sm:$0xff]  }
  0x90   :  { %3621 = vmatprep.subr.bf16.mxu0 %v5595_v63  ;;  %3785 = vmatprep.subr.bf16.mxu1 %v5598_v0  ;;  %v5675_v62 = vld [vmem:[#allocation2 + $0x910] ss:$48 sps:$4 sm:$0xff]   ;;  %v5680_v63 = vld [vmem:[#allocation2 + $0xf64] ss:$48 sps:$4 sm:$0xff]  }
  0x91   :  { %v5683_v0 = vld [vmem:[#allocation2 + $0x974] ss:$48 sps:$4 sm:$0xff]  }
  0x93   :  { %3622 = vmatpush1.bf16.msra.mxu0 %v5593_v1  ;;  %3786 = vmatpush1.bf16.msra.mxu1 %v5596_v2  ;;  %v5678_v1 = vld [vmem:[#allocation2 + $0xf60] ss:$48 sps:$4 sm:$0xff]  }
  0x94   :  { %3623 = vmatprep.subr.bf16.mxu0 %v5601_v3  ;;  %3787 = vmatprep.subr.bf16.mxu1 %v5604_v4  ;;  %v5681_v2 = vld [vmem:[#allocation2 + $0x970] ss:$48 sps:$4 sm:$0xff]   ;;  %v5686_v3 = vld [vmem:[#allocation2 + $0xfc4] ss:$48 sps:$4 sm:$0xff]  }
  0x95   :  { %v5689_v4 = vld [vmem:[#allocation2 + $0x9d4] ss:$48 sps:$4 sm:$0xff]  }
  0x97   :  { %3624 = vmatpush1.bf16.msra.mxu0 %v5599_v5  ;;  %3788 = vmatpush1.bf16.msra.mxu1 %v5602_v6  ;;  %v5684_v5 = vld [vmem:[#allocation2 + $0xfc0] ss:$48 sps:$4 sm:$0xff]  }
  0x98   :  { %3625 = vmatprep.subr.bf16.mxu0 %v5607_v7  ;;  %3789 = vmatprep.subr.bf16.mxu1 %v5610_v8  ;;  %v5687_v6 = vld [vmem:[#allocation2 + $0x9d0] ss:$48 sps:$4 sm:$0xff]   ;;  %v5692_v7 = vld [vmem:[#allocation2 + $0x1024] ss:$48 sps:$4 sm:$0xff]  }
  0x99   :  { %v5695_v8 = vld [vmem:[#allocation2 + $0xa34] ss:$48 sps:$4 sm:$0xff]  }
  0x9b   :  { %3626 = vmatpush1.bf16.msra.mxu0 %v5605_v10  ;;  %3790 = vmatpush1.bf16.msra.mxu1 %v5608_v11  ;;  %v5690_v10 = vld [vmem:[#allocation2 + $0x1020] ss:$48 sps:$4 sm:$0xff]  }
  0x9c   :  { %3627 = vmatprep.subr.bf16.mxu0 %v5613_v12  ;;  %3791 = vmatprep.subr.bf16.mxu1 %v5616_v13  ;;  %v5693_v11 = vld [vmem:[#allocation2 + $0xa30] ss:$48 sps:$4 sm:$0xff]   ;;  %v5698_v12 = vld [vmem:[#allocation2 + $0x1084] ss:$48 sps:$4 sm:$0xff]  }
  0x9d   :  { %v5701_v13 = vld [vmem:[#allocation2 + $0xa94] ss:$48 sps:$4 sm:$0xff]  }
  0x9f   :  { %3628 = vmatpush1.bf16.msra.mxu0 %v5611_v14  ;;  %3792 = vmatpush1.bf16.msra.mxu1 %v5614_v16  ;;  %v5696_v14 = vld [vmem:[#allocation2 + $0x1080] ss:$48 sps:$4 sm:$0xff]  }
  0xa0   :  { %3629 = vmatprep.subr.bf16.mxu0 %v5619_v17  ;;  %3793 = vmatprep.subr.bf16.mxu1 %v5622_v18  ;;  %v5699_v16 = vld [vmem:[#allocation2 + $0xa90] ss:$48 sps:$4 sm:$0xff]   ;;  %v5704_v17 = vld [vmem:[#allocation2 + $0x10e4] ss:$48 sps:$4 sm:$0xff]  }
  0xa1   :  { %v5707_v18 = vld [vmem:[#allocation2 + $0xaf4] ss:$48 sps:$4 sm:$0xff]  }
  0xa3   :  { %3630 = vmatpush1.bf16.msra.mxu0 %v5617_v19  ;;  %3794 = vmatpush1.bf16.msra.mxu1 %v5620_v22  ;;  %v5702_v19 = vld [vmem:[#allocation2 + $0x10e0] ss:$48 sps:$4 sm:$0xff]  }
  0xa4   :  { %3640 = vmatprep.subr.bf16.mxu0 %v5625_v23  ;;  %3845 = vmatprep.subr.bf16.mxu1 %v5629_v24  ;;  %v5705_v22 = vld [vmem:[#allocation2 + $0xaf0] ss:$48 sps:$4 sm:$0xff]   ;;  %v5710_v23 = vld [vmem:[#allocation2 + $0x1144] ss:$48 sps:$4 sm:$0xff]  }
  0xa5   :  { %v5713_v24 = vld [vmem:[#allocation2 + $0xb54] ss:$48 sps:$4 sm:$0xff]  }
  0xa6   :  { %3632 = vmatmul.mubr.bf16.vlgmr.msra.gmra.mrb[4].mxu0 %v6445_v25  ;;  %3796 = vmatmul.mubr.bf16.vlgmr.msra.gmra.mrb[4].mxu1 %v6449_v27 }
  0xa7   :  { %3641 = vmatpush1.bf16.msra.mxu0 %v5623_v26  ;;  %3846 = vmatpush1.bf16.msra.mxu1 %v5627_v28  ;;  %v5708_v26 = vld [vmem:[#allocation2 + $0x1140] ss:$48 sps:$4 sm:$0xff]  }
  0xa8   :  { %3642 = vmatprep.subr.bf16.mxu0 %v5632_v29  ;;  %3847 = vmatprep.subr.bf16.mxu1 %v5635_v30  ;;  %v5711_v28 = vld [vmem:[#allocation2 + $0xb50] ss:$48 sps:$4 sm:$0xff]   ;;  %v5716_v29 = vld [vmem:[#allocation2 + $0x11a4] ss:$48 sps:$4 sm:$0xff]  }
  0xa9   :  { %3672 = vmatprep.mubr.bf16.mxu0 %v6437_v21  ;;  %3877 = vmatprep.mubr.bf16.mxu1 %v6434_v20  ;;  %v5719_v30 = vld [vmem:[#allocation2 + $0xbb4] ss:$48 sps:$4 sm:$0xff]  }
  0xab   :  { %3643 = vmatpush1.bf16.msra.mxu0 %v5630_v31  ;;  %3848 = vmatpush1.bf16.msra.mxu1 %v5633_v32  ;;  %v5714_v31 = vld [vmem:[#allocation2 + $0x11a0] ss:$48 sps:$4 sm:$0xff]  }
  0xac   :  { %3644 = vmatprep.subr.bf16.mxu0 %v5638_v33  ;;  %3849 = vmatprep.subr.bf16.mxu1 %v5641_v9  ;;  %v5717_v32 = vld [vmem:[#allocation2 + $0xbb0] ss:$48 sps:$4 sm:$0xff]   ;;  %v5722_v33 = vld [vmem:[#allocation2 + $0x60c] ss:$48 sps:$4 sm:$0xff]  }
  0xad   :  { %v5725_v9 = vld [vmem:[#allocation2 + $0x1c] ss:$48 sps:$4 sm:$0xff]  }
  0xaf   :  { %3645 = vmatpush1.bf16.msra.mxu0 %v5636_v34  ;;  %3850 = vmatpush1.bf16.msra.mxu1 %v5639_v35  ;;  %v5720_v34 = vld [vmem:[#allocation2 + $0x608] ss:$48 sps:$4 sm:$0xff]  }
  0xb0   :  { %3646 = vmatprep.subr.bf16.mxu0 %v5644_v36  ;;  %3851 = vmatprep.subr.bf16.mxu1 %v5647_v37  ;;  %v5723_v35 = vld [vmem:[#allocation2 + $0x18] ss:$48 sps:$4 sm:$0xff]   ;;  %v5728_v36 = vld [vmem:[#allocation2 + $0x66c] ss:$48 sps:$4 sm:$0xff]  }
  0xb1   :  { %v5731_v37 = vld [vmem:[#allocation2 + $0x7c] ss:$48 sps:$4 sm:$0xff]  }
  0xb3   :  { %3647 = vmatpush1.bf16.msra.mxu0 %v5642_v38  ;;  %3852 = vmatpush1.bf16.msra.mxu1 %v5645_v39  ;;  %v5726_v38 = vld [vmem:[#allocation2 + $0x668] ss:$48 sps:$4 sm:$0xff]  }
  0xb4   :  { %3648 = vmatprep.subr.bf16.mxu0 %v5650_v40  ;;  %3853 = vmatprep.subr.bf16.mxu1 %v5653_v41  ;;  %v5729_v39 = vld [vmem:[#allocation2 + $0x78] ss:$48 sps:$4 sm:$0xff]   ;;  %v5734_v40 = vld [vmem:[#allocation2 + $0x6cc] ss:$48 sps:$4 sm:$0xff]  }
  0xb5   :  { %v5737_v41 = vld [vmem:[#allocation2 + $0xdc] ss:$48 sps:$4 sm:$0xff]  }
  0xb7   :  { %3649 = vmatpush1.bf16.msra.mxu0 %v5648_v42  ;;  %3854 = vmatpush1.bf16.msra.mxu1 %v5651_v44  ;;  %v5732_v42 = vld [vmem:[#allocation2 + $0x6c8] ss:$48 sps:$4 sm:$0xff]  }
  0xb8   :  { %3650 = vmatprep.subr.bf16.mxu0 %v5656_v45  ;;  %3855 = vmatprep.subr.bf16.mxu1 %v5659_v46  ;;  %v5735_v44 = vld [vmem:[#allocation2 + $0xd8] ss:$48 sps:$4 sm:$0xff]   ;;  %v5740_v45 = vld [vmem:[#allocation2 + $0x72c] ss:$48 sps:$4 sm:$0xff]  }
  0xb9   :  { %v5743_v46 = vld [vmem:[#allocation2 + $0x13c] ss:$48 sps:$4 sm:$0xff]  }
  0xbb   :  { %3651 = vmatpush1.bf16.msra.mxu0 %v5654_v47  ;;  %3856 = vmatpush1.bf16.msra.mxu1 %v5657_v48  ;;  %v5738_v47 = vld [vmem:[#allocation2 + $0x728] ss:$48 sps:$4 sm:$0xff]  }
  0xbc   :  { %3652 = vmatprep.subr.bf16.mxu0 %v5662_v50  ;;  %3857 = vmatprep.subr.bf16.mxu1 %v5665_v51  ;;  %v5741_v48 = vld [vmem:[#allocation2 + $0x138] ss:$48 sps:$4 sm:$0xff]   ;;  %v5746_v50 = vld [vmem:[#allocation2 + $0x78c] ss:$48 sps:$4 sm:$0xff]  }
  0xbd   :  { %v5749_v51 = vld [vmem:[#allocation2 + $0x19c] ss:$48 sps:$4 sm:$0xff]  }
  0xbf   :  { %3653 = vmatpush1.bf16.msra.mxu0 %v5660_v52  ;;  %3858 = vmatpush1.bf16.msra.mxu1 %v5663_v53  ;;  %v5744_v52 = vld [vmem:[#allocation2 + $0x788] ss:$48 sps:$4 sm:$0xff]  }
  0xc0   :  { %3654 = vmatprep.subr.bf16.mxu0 %v5668_v54  ;;  %3859 = vmatprep.subr.bf16.mxu1 %v5671_v55  ;;  %v5747_v53 = vld [vmem:[#allocation2 + $0x198] ss:$48 sps:$4 sm:$0xff]   ;;  %v5752_v54 = vld [vmem:[#allocation2 + $0x7ec] ss:$48 sps:$4 sm:$0xff]  }
  0xc1   :  { %v5755_v55 = vld [vmem:[#allocation2 + $0x1fc] ss:$48 sps:$4 sm:$0xff]  }
  0xc3   :  { %3655 = vmatpush1.bf16.msra.mxu0 %v5666_v56  ;;  %3860 = vmatpush1.bf16.msra.mxu1 %v5669_v57  ;;  %v5750_v56 = vld [vmem:[#allocation2 + $0x7e8] ss:$48 sps:$4 sm:$0xff]  }
  0xc4   :  { %3656 = vmatprep.subr.bf16.mxu0 %v5674_v58  ;;  %3861 = vmatprep.subr.bf16.mxu1 %v5677_v59  ;;  %v5753_v57 = vld [vmem:[#allocation2 + $0x1f8] ss:$48 sps:$4 sm:$0xff]   ;;  %v5758_v58 = vld [vmem:[#allocation2 + $0x84c] ss:$48 sps:$4 sm:$0xff]  }
  0xc5   :  { %v5761_v59 = vld [vmem:[#allocation2 + $0x25c] ss:$48 sps:$4 sm:$0xff]  }
  0xc7   :  { %3657 = vmatpush1.bf16.msra.mxu0 %v5672_v61  ;;  %3862 = vmatpush1.bf16.msra.mxu1 %v5675_v62  ;;  %v5756_v61 = vld [vmem:[#allocation2 + $0x848] ss:$48 sps:$4 sm:$0xff]  }
  0xc8   :  { %3658 = vmatprep.subr.bf16.mxu0 %v5680_v63  ;;  %3863 = vmatprep.subr.bf16.mxu1 %v5683_v0  ;;  %v5759_v62 = vld [vmem:[#allocation2 + $0x258] ss:$48 sps:$4 sm:$0xff]   ;;  %v5764_v63 = vld [vmem:[#allocation2 + $0x8ac] ss:$48 sps:$4 sm:$0xff]  }
  0xc9   :  { %v5767_v0 = vld [vmem:[#allocation2 + $0x2bc] ss:$48 sps:$4 sm:$0xff]  }
  0xcb   :  { %3659 = vmatpush1.bf16.msra.mxu0 %v5678_v1  ;;  %3864 = vmatpush1.bf16.msra.mxu1 %v5681_v2  ;;  %v5762_v1 = vld [vmem:[#allocation2 + $0x8a8] ss:$48 sps:$4 sm:$0xff]  }
  0xcc   :  { %3660 = vmatprep.subr.bf16.mxu0 %v5686_v3  ;;  %3865 = vmatprep.subr.bf16.mxu1 %v5689_v4  ;;  %v5765_v2 = vld [vmem:[#allocation2 + $0x2b8] ss:$48 sps:$4 sm:$0xff]   ;;  %v5770_v3 = vld [vmem:[#allocation2 + $0x90c] ss:$48 sps:$4 sm:$0xff]  }
  0xcd   :  { %v5773_v4 = vld [vmem:[#allocation2 + $0x31c] ss:$48 sps:$4 sm:$0xff]  }
  0xcf   :  { %3661 = vmatpush1.bf16.msra.mxu0 %v5684_v5  ;;  %3866 = vmatpush1.bf16.msra.mxu1 %v5687_v6  ;;  %v5768_v5 = vld [vmem:[#allocation2 + $0x908] ss:$48 sps:$4 sm:$0xff]  }
  0xd0   :  { %3662 = vmatprep.subr.bf16.mxu0 %v5692_v7  ;;  %3867 = vmatprep.subr.bf16.mxu1 %v5695_v8  ;;  %v5771_v6 = vld [vmem:[#allocation2 + $0x318] ss:$48 sps:$4 sm:$0xff]   ;;  %v5776_v7 = vld [vmem:[#allocation2 + $0x96c] ss:$48 sps:$4 sm:$0xff]  }
  0xd1   :  { %v5779_v8 = vld [vmem:[#allocation2 + $0x37c] ss:$48 sps:$4 sm:$0xff]  }
  0xd3   :  { %3663 = vmatpush1.bf16.msra.mxu0 %v5690_v10  ;;  %3868 = vmatpush1.bf16.msra.mxu1 %v5693_v11  ;;  %v5774_v10 = vld [vmem:[#allocation2 + $0x968] ss:$48 sps:$4 sm:$0xff]  }
  0xd4   :  { %3664 = vmatprep.subr.bf16.mxu0 %v5698_v12  ;;  %3869 = vmatprep.subr.bf16.mxu1 %v5701_v13  ;;  %v5777_v11 = vld [vmem:[#allocation2 + $0x378] ss:$48 sps:$4 sm:$0xff]   ;;  %v5782_v12 = vld [vmem:[#allocation2 + $0x9cc] ss:$48 sps:$4 sm:$0xff]  }
  0xd5   :  { %v5785_v13 = vld [vmem:[#allocation2 + $0x3dc] ss:$48 sps:$4 sm:$0xff]  }
  0xd7   :  { %3665 = vmatpush1.bf16.msra.mxu0 %v5696_v14  ;;  %3870 = vmatpush1.bf16.msra.mxu1 %v5699_v16  ;;  %v5780_v14 = vld [vmem:[#allocation2 + $0x9c8] ss:$48 sps:$4 sm:$0xff]  }
  0xd8   :  { %3666 = vmatprep.subr.bf16.mxu0 %v5704_v17  ;;  %3871 = vmatprep.subr.bf16.mxu1 %v5707_v18  ;;  %v5783_v16 = vld [vmem:[#allocation2 + $0x3d8] ss:$48 sps:$4 sm:$0xff]   ;;  %v5788_v17 = vld [vmem:[#allocation2 + $0xa2c] ss:$48 sps:$4 sm:$0xff]  }
  0xd9   :  { %v5791_v18 = vld [vmem:[#allocation2 + $0x43c] ss:$48 sps:$4 sm:$0xff]  }
  0xdb   :  { %3667 = vmatpush1.bf16.msra.mxu0 %v5702_v19  ;;  %3872 = vmatpush1.bf16.msra.mxu1 %v5705_v22  ;;  %v5786_v19 = vld [vmem:[#allocation2 + $0xa28] ss:$48 sps:$4 sm:$0xff]  }
  0xdc   :  { %3668 = vmatprep.subr.bf16.mxu0 %v5710_v23  ;;  %3873 = vmatprep.subr.bf16.mxu1 %v5713_v24  ;;  %v5789_v22 = vld [vmem:[#allocation2 + $0x438] ss:$48 sps:$4 sm:$0xff]   ;;  %v5794_v23 = vld [vmem:[#allocation2 + $0xa8c] ss:$48 sps:$4 sm:$0xff]  }
  0xdd   :  { %v5797_v24 = vld [vmem:[#allocation2 + $0x49c] ss:$48 sps:$4 sm:$0xff]  }
  0xdf   :  { %3669 = vmatpush1.bf16.msra.mxu0 %v5708_v26  ;;  %3874 = vmatpush1.bf16.msra.mxu1 %v5711_v28  ;;  %v5792_v26 = vld [vmem:[#allocation2 + $0xa88] ss:$48 sps:$4 sm:$0xff]  }
  0xe0   :  { %3670 = vmatprep.subr.bf16.mxu0 %v5716_v29  ;;  %3875 = vmatprep.subr.bf16.mxu1 %v5719_v30  ;;  %v5795_v28 = vld [vmem:[#allocation2 + $0x498] ss:$48 sps:$4 sm:$0xff]   ;;  %v5800_v29 = vld [vmem:[#allocation2 + $0xaec] ss:$48 sps:$4 sm:$0xff]  }
  0xe1   :  { %v5803_v30 = vld [vmem:[#allocation2 + $0x4fc] ss:$48 sps:$4 sm:$0xff]  }
  0xe3   :  { %3671 = vmatpush1.bf16.msra.mxu0 %v5714_v31  ;;  %3876 = vmatpush1.bf16.msra.mxu1 %v5717_v32  ;;  %v5798_v31 = vld [vmem:[#allocation2 + $0xae8] ss:$48 sps:$4 sm:$0xff]  }
  0xe4   :  { %3722 = vmatprep.subr.bf16.mxu0 %v5722_v33  ;;  %3927 = vmatprep.subr.bf16.mxu1 %v5725_v9  ;;  %v5801_v32 = vld [vmem:[#allocation2 + $0x4f8] ss:$48 sps:$4 sm:$0xff]   ;;  %v5806_v33 = vld [vmem:[#allocation2 + $0xb4c] ss:$48 sps:$4 sm:$0xff]  }
  0xe5   :  { %v5809_v9 = vld [vmem:[#allocation2 + $0x55c] ss:$48 sps:$4 sm:$0xff]  }
  0xe6   :  { %3673 = vmatmul.mubr.bf16.vlgmr.msra.gmra.mrb[8].mxu0 %v6449_v27  ;;  %3878 = vmatmul.mubr.bf16.vlgmr.msra.gmra.mrb[8].mxu1 %v6445_v25 }
  0xe7   :  { %3723 = vmatpush1.bf16.msra.mxu0 %v5720_v34  ;;  %3928 = vmatpush1.bf16.msra.mxu1 %v5723_v35  ;;  %v5804_v34 = vld [vmem:[#allocation2 + $0xb48] ss:$48 sps:$4 sm:$0xff]  }
  0xe8   :  { %3724 = vmatprep.subr.bf16.mxu0 %v5728_v36  ;;  %3929 = vmatprep.subr.bf16.mxu1 %v5731_v37  ;;  %v5807_v35 = vld [vmem:[#allocation2 + $0x558] ss:$48 sps:$4 sm:$0xff]   ;;  %v5812_v36 = vld [vmem:[#allocation2 + $0xbac] ss:$48 sps:$4 sm:$0xff]  }
  0xe9   :  { %3754 = vmatprep.mubr.bf16.mxu0 %v6434_v20  ;;  %3959 = vmatprep.mubr.bf16.mxu1 %v6420_v60  ;;  %v5815_v37 = vld [vmem:[#allocation2 + $0x5bc] ss:$48 sps:$4 sm:$0xff]  }
  0xeb   :  { %3725 = vmatpush1.bf16.msra.mxu0 %v5726_v38  ;;  %3930 = vmatpush1.bf16.msra.mxu1 %v5729_v39  ;;  %v5810_v38 = vld [vmem:[#allocation2 + $0xba8] ss:$48 sps:$4 sm:$0xff]  }
  0xec   :  { %3726 = vmatprep.subr.bf16.mxu0 %v5734_v40  ;;  %3931 = vmatprep.subr.bf16.mxu1 %v5737_v41  ;;  %v5813_v39 = vld [vmem:[#allocation2 + $0x5b8] ss:$48 sps:$4 sm:$0xff]   ;;  %v5818_v40 = vld [vmem:[#allocation2 + $0x14] ss:$48 sps:$4 sm:$0xff]   ;;  %v5821_v41 = vld [vmem:[#allocation2 + $0x61c] ss:$48 sps:$4 sm:$0xff]  }
  0xef   :  { %3727 = vmatpush1.bf16.msra.mxu0 %v5732_v42  ;;  %3932 = vmatpush1.bf16.msra.mxu1 %v5735_v44  ;;  %v5816_v42 = vld [vmem:[#allocation2 + $0x10] ss:$48 sps:$4 sm:$0xff]   ;;  %v5819_v44 = vld [vmem:[#allocation2 + $0x618] ss:$48 sps:$4 sm:$0xff]  }
  0xf0   :  { %3728 = vmatprep.subr.bf16.mxu0 %v5740_v45  ;;  %3933 = vmatprep.subr.bf16.mxu1 %v5743_v46  ;;  %v5824_v45 = vld [vmem:[#allocation2 + $0x74] ss:$48 sps:$4 sm:$0xff]   ;;  %v5827_v46 = vld [vmem:[#allocation2 + $0x67c] ss:$48 sps:$4 sm:$0xff]  }
  0xf3   :  { %3729 = vmatpush1.bf16.msra.mxu0 %v5738_v47  ;;  %3934 = vmatpush1.bf16.msra.mxu1 %v5741_v48  ;;  %v5822_v47 = vld [vmem:[#allocation2 + $0x70] ss:$48 sps:$4 sm:$0xff]   ;;  %v5825_v48 = vld [vmem:[#allocation2 + $0x678] ss:$48 sps:$4 sm:$0xff]  }
  0xf4   :  { %3730 = vmatprep.subr.bf16.mxu0 %v5746_v50  ;;  %3935 = vmatprep.subr.bf16.mxu1 %v5749_v51  ;;  %v5830_v50 = vld [vmem:[#allocation2 + $0xd4] ss:$48 sps:$4 sm:$0xff]   ;;  %v5833_v51 = vld [vmem:[#allocation2 + $0x6dc] ss:$48 sps:$4 sm:$0xff]  }
  0xf7   :  { %3731 = vmatpush1.bf16.msra.mxu0 %v5744_v52  ;;  %3936 = vmatpush1.bf16.msra.mxu1 %v5747_v53  ;;  %v5828_v52 = vld [vmem:[#allocation2 + $0xd0] ss:$48 sps:$4 sm:$0xff]   ;;  %v5831_v53 = vld [vmem:[#allocation2 + $0x6d8] ss:$48 sps:$4 sm:$0xff]  }
  0xf8   :  { %3732 = vmatprep.subr.bf16.mxu0 %v5752_v54  ;;  %3937 = vmatprep.subr.bf16.mxu1 %v5755_v55  ;;  %v5836_v54 = vld [vmem:[#allocation2 + $0x134] ss:$48 sps:$4 sm:$0xff]   ;;  %v5839_v55 = vld [vmem:[#allocation2 + $0x73c] ss:$48 sps:$4 sm:$0xff]  }
  0xfb   :  { %3733 = vmatpush1.bf16.msra.mxu0 %v5750_v56  ;;  %3938 = vmatpush1.bf16.msra.mxu1 %v5753_v57  ;;  %v5834_v56 = vld [vmem:[#allocation2 + $0x130] ss:$48 sps:$4 sm:$0xff]   ;;  %v5837_v57 = vld [vmem:[#allocation2 + $0x738] ss:$48 sps:$4 sm:$0xff]  }
  0xfc   :  { %3734 = vmatprep.subr.bf16.mxu0 %v5758_v58  ;;  %3939 = vmatprep.subr.bf16.mxu1 %v5761_v59  ;;  %v5842_v58 = vld [vmem:[#allocation2 + $0x194] ss:$48 sps:$4 sm:$0xff]   ;;  %v5845_v59 = vld [vmem:[#allocation2 + $0x79c] ss:$48 sps:$4 sm:$0xff]  }
  0xff   :  { %3735 = vmatpush1.bf16.msra.mxu0 %v5756_v61  ;;  %3940 = vmatpush1.bf16.msra.mxu1 %v5759_v62  ;;  %v5840_v61 = vld [vmem:[#allocation2 + $0x190] ss:$48 sps:$4 sm:$0xff]   ;;  %v5843_v62 = vld [vmem:[#allocation2 + $0x798] ss:$48 sps:$4 sm:$0xff]  }
 0x100   :  { %3736 = vmatprep.subr.bf16.mxu0 %v5764_v63  ;;  %3941 = vmatprep.subr.bf16.mxu1 %v5767_v0  ;;  %v5848_v63 = vld [vmem:[#allocation2 + $0x1f4] ss:$48 sps:$4 sm:$0xff]   ;;  %v5851_v0 = vld [vmem:[#allocation2 + $0x7fc] ss:$48 sps:$4 sm:$0xff]  }
 0x103   :  { %3737 = vmatpush1.bf16.msra.mxu0 %v5762_v1  ;;  %3942 = vmatpush1.bf16.msra.mxu1 %v5765_v2  ;;  %v5846_v1 = vld [vmem:[#allocation2 + $0x1f0] ss:$48 sps:$4 sm:$0xff]   ;;  %v5849_v2 = vld [vmem:[#allocation2 + $0x7f8] ss:$48 sps:$4 sm:$0xff]  }
 0x104   :  { %3738 = vmatprep.subr.bf16.mxu0 %v5770_v3  ;;  %3943 = vmatprep.subr.bf16.mxu1 %v5773_v4  ;;  %v5854_v3 = vld [vmem:[#allocation2 + $0x254] ss:$48 sps:$4 sm:$0xff]   ;;  %v5857_v4 = vld [vmem:[#allocation2 + $0x85c] ss:$48 sps:$4 sm:$0xff]  }
 0x107   :  { %3739 = vmatpush1.bf16.msra.mxu0 %v5768_v5  ;;  %3944 = vmatpush1.bf16.msra.mxu1 %v5771_v6 }
 0x108   :  { %3740 = vmatprep.subr.bf16.mxu0 %v5776_v7  ;;  %3945 = vmatprep.subr.bf16.mxu1 %v5779_v8  ;;  %v5852_v8 = vld [vmem:[#allocation2 + $0x250] ss:$48 sps:$4 sm:$0xff]  }
 0x10b   :  { %3741 = vmatpush1.bf16.msra.mxu0 %v5774_v10  ;;  %3946 = vmatpush1.bf16.msra.mxu1 %v5777_v11  ;;  %v5855_v10 = vld [vmem:[#allocation2 + $0x858] ss:$48 sps:$4 sm:$0xff]  }
 0x10c   :  { %3742 = vmatprep.subr.bf16.mxu0 %v5782_v12  ;;  %3947 = vmatprep.subr.bf16.mxu1 %v5785_v13 }
 0x10f   :  { %3743 = vmatpush1.bf16.msra.mxu0 %v5780_v14  ;;  %3948 = vmatpush1.bf16.msra.mxu1 %v5783_v16  ;;  %v5860_v16 = vld [vmem:[#allocation2 + $0x2b4] ss:$48 sps:$4 sm:$0xff]  }
 0x110   :  { %3744 = vmatprep.subr.bf16.mxu0 %v5788_v17  ;;  %3949 = vmatprep.subr.bf16.mxu1 %v5791_v18  ;;  %v5863_v17 = vld [vmem:[#allocation2 + $0x8bc] ss:$48 sps:$4 sm:$0xff]  }
 0x113   :  { %3745 = vmatpush1.bf16.msra.mxu0 %v5786_v19  ;;  %3950 = vmatpush1.bf16.msra.mxu1 %v5789_v22  ;;  %v5858_v19 = vld [vmem:[#allocation2 + $0x2b0] ss:$48 sps:$4 sm:$0xff]   ;;  %v5861_v22 = vld [vmem:[#allocation2 + $0x8b8] ss:$48 sps:$4 sm:$0xff]  }
 0x114   :  { %3746 = vmatprep.subr.bf16.mxu0 %v5794_v23  ;;  %3951 = vmatprep.subr.bf16.mxu1 %v5797_v24  ;;  %v5866_v23 = vld [vmem:[#allocation2 + $0x314] ss:$48 sps:$4 sm:$0xff]   ;;  %v5869_v24 = vld [vmem:[#allocation2 + $0x91c] ss:$48 sps:$4 sm:$0xff]  }
 0x117   :  { %3747 = vmatpush1.bf16.msra.mxu0 %v5792_v26  ;;  %3952 = vmatpush1.bf16.msra.mxu1 %v5795_v28  ;;  %v5864_v26 = vld [vmem:[#allocation2 + $0x310] ss:$48 sps:$4 sm:$0xff]   ;;  %v5867_v28 = vld [vmem:[#allocation2 + $0x918] ss:$48 sps:$4 sm:$0xff]  }
 0x118   :  { %3748 = vmatprep.subr.bf16.mxu0 %v5800_v29  ;;  %3953 = vmatprep.subr.bf16.mxu1 %v5803_v30  ;;  %v5872_v29 = vld [vmem:[#allocation2 + $0x374] ss:$48 sps:$4 sm:$0xff]   ;;  %v5875_v30 = vld [vmem:[#allocation2 + $0x97c] ss:$48 sps:$4 sm:$0xff]  }
 0x11b   :  { %3749 = vmatpush1.bf16.msra.mxu0 %v5798_v31  ;;  %3954 = vmatpush1.bf16.msra.mxu1 %v5801_v32  ;;  %v5870_v31 = vld [vmem:[#allocation2 + $0x370] ss:$48 sps:$4 sm:$0xff]   ;;  %v5873_v32 = vld [vmem:[#allocation2 + $0x978] ss:$48 sps:$4 sm:$0xff]  }
 0x11c   :  { %3750 = vmatprep.subr.bf16.mxu0 %v5806_v33  ;;  %3955 = vmatprep.subr.bf16.mxu1 %v5809_v9  ;;  %v5878_v33 = vld [vmem:[#allocation2 + $0x3d4] ss:$48 sps:$4 sm:$0xff]   ;;  %v5881_v9 = vld [vmem:[#allocation2 + $0x9dc] ss:$48 sps:$4 sm:$0xff]  }
 0x11f   :  { %3751 = vmatpush1.bf16.msra.mxu0 %v5804_v34  ;;  %3956 = vmatpush1.bf16.msra.mxu1 %v5807_v35  ;;  %v5876_v34 = vld [vmem:[#allocation2 + $0x3d0] ss:$48 sps:$4 sm:$0xff]   ;;  %v5879_v35 = vld [vmem:[#allocation2 + $0x9d8] ss:$48 sps:$4 sm:$0xff]  }
 0x120   :  { %3752 = vmatprep.subr.bf16.mxu0 %v5812_v36  ;;  %3957 = vmatprep.subr.bf16.mxu1 %v5815_v37  ;;  %v5884_v36 = vld [vmem:[#allocation2 + $0x434] ss:$48 sps:$4 sm:$0xff]   ;;  %v5887_v37 = vld [vmem:[#allocation2 + $0xa3c] ss:$48 sps:$4 sm:$0xff]  }
 0x123   :  { %3753 = vmatpush1.bf16.msra.mxu0 %v5810_v38  ;;  %3958 = vmatpush1.bf16.msra.mxu1 %v5813_v39  ;;  %v5882_v38 = vld [vmem:[#allocation2 + $0x430] ss:$48 sps:$4 sm:$0xff]   ;;  %v5885_v39 = vld [vmem:[#allocation2 + $0xa38] ss:$48 sps:$4 sm:$0xff]  }
 0x124   :  { %3804 = vmatprep.subr.bf16.mxu0 %v5818_v40  ;;  %3968 = vmatprep.subr.bf16.mxu1 %v5821_v41  ;;  %v5890_v40 = vld [vmem:[#allocation2 + $0x494] ss:$48 sps:$4 sm:$0xff]   ;;  %v5893_v41 = vld [vmem:[#allocation2 + $0xa9c] ss:$48 sps:$4 sm:$0xff]  }
 0x126   :  { %3755 = vmatmul.mubr.bf16.vlgmr.msra.gmra.mrb[12].mxu0 %v6445_v25  ;;  %3960 = vmatmul.mubr.bf16.vlgmr.msra.gmra.mrb[12].mxu1 %v6430_v15 }
 0x127   :  { %3805 = vmatpush1.bf16.msra.mxu0 %v5816_v42  ;;  %3969 = vmatpush1.bf16.msra.mxu1 %v5819_v44  ;;  %v5888_v42 = vld [vmem:[#allocation2 + $0x490] ss:$48 sps:$4 sm:$0xff]   ;;  %v5891_v44 = vld [vmem:[#allocation2 + $0xa98] ss:$48 sps:$4 sm:$0xff]  }
 0x128   :  { %3806 = vmatprep.subr.bf16.mxu0 %v5824_v45  ;;  %3970 = vmatprep.subr.bf16.mxu1 %v5827_v46  ;;  %v5896_v45 = vld [vmem:[#allocation2 + $0x4f4] ss:$48 sps:$4 sm:$0xff]   ;;  %v5899_v46 = vld [vmem:[#allocation2 + $0xafc] ss:$48 sps:$4 sm:$0xff]  }
 0x129   :  { %3836 = vmatprep.mubr.bf16.mxu0 %v6420_v60  ;;  %4000 = vmatprep.mubr.bf16.mxu1 %v6434_v20 }
 0x12b   :  { %3807 = vmatpush1.bf16.msra.mxu0 %v5822_v47  ;;  %3971 = vmatpush1.bf16.msra.mxu1 %v5825_v48  ;;  %v5894_v47 = vld [vmem:[#allocation2 + $0x4f0] ss:$48 sps:$4 sm:$0xff]   ;;  %v5897_v48 = vld [vmem:[#allocation2 + $0xaf8] ss:$48 sps:$4 sm:$0xff]  }
 0x12c   :  { %3808 = vmatprep.subr.bf16.mxu0 %v5830_v50  ;;  %3972 = vmatprep.subr.bf16.mxu1 %v5833_v51  ;;  %v5902_v50 = vld [vmem:[#allocation2 + $0x554] ss:$48 sps:$4 sm:$0xff]   ;;  %v5905_v51 = vld [vmem:[#allocation2 + $0xb5c] ss:$48 sps:$4 sm:$0xff]  }
 0x12f   :  { %3809 = vmatpush1.bf16.msra.mxu0 %v5828_v52  ;;  %3973 = vmatpush1.bf16.msra.mxu1 %v5831_v53  ;;  %v5900_v52 = vld [vmem:[#allocation2 + $0x550] ss:$48 sps:$4 sm:$0xff]   ;;  %v5903_v53 = vld [vmem:[#allocation2 + $0xb58] ss:$48 sps:$4 sm:$0xff]  }
 0x130   :  { %3810 = vmatprep.subr.bf16.mxu0 %v5836_v54  ;;  %3974 = vmatprep.subr.bf16.mxu1 %v5839_v55  ;;  %v5908_v54 = vld [vmem:[#allocation2 + $0x5b4] ss:$48 sps:$4 sm:$0xff]   ;;  %v5911_v55 = vld [vmem:[#allocation2 + $0xbbc] ss:$48 sps:$4 sm:$0xff]  }
 0x133   :  { %3811 = vmatpush1.bf16.msra.mxu0 %v5834_v56  ;;  %3975 = vmatpush1.bf16.msra.mxu1 %v5837_v57  ;;  %v5906_v56 = vld [vmem:[#allocation2 + $0x5b0] ss:$48 sps:$4 sm:$0xff]   ;;  %v5909_v57 = vld [vmem:[#allocation2 + $0xbb8] ss:$48 sps:$4 sm:$0xff]  }
 0x134   :  { %3812 = vmatprep.subr.bf16.mxu0 %v5842_v58  ;;  %3976 = vmatprep.subr.bf16.mxu1 %v5845_v59  ;;  %v5914_v58 = vld [vmem:[#allocation2 + $0xc14] ss:$48 sps:$4 sm:$0xff]   ;;  %v5917_v59 = vld [vmem:[#allocation2 + $0xc1c] ss:$48 sps:$4 sm:$0xff]  }
 0x137   :  { %3813 = vmatpush1.bf16.msra.mxu0 %v5840_v61  ;;  %3977 = vmatpush1.bf16.msra.mxu1 %v5843_v62  ;;  %v5912_v61 = vld [vmem:[#allocation2 + $0xc10] ss:$48 sps:$4 sm:$0xff]   ;;  %v5915_v62 = vld [vmem:[#allocation2 + $0xc18] ss:$48 sps:$4 sm:$0xff]  }
 0x138   :  { %3814 = vmatprep.subr.bf16.mxu0 %v5848_v63  ;;  %3978 = vmatprep.subr.bf16.mxu1 %v5851_v0  ;;  %v5920_v63 = vld [vmem:[#allocation2 + $0xc74] ss:$48 sps:$4 sm:$0xff]   ;;  %v5923_v0 = vld [vmem:[#allocation2 + $0xc7c] ss:$48 sps:$4 sm:$0xff]  }
 0x139   :  { %v6463_v5 = vpop.f32.mrb[0].mxu0  ;;  %v6465_v6 = vpop.f32.mrb[0].mxu1 }
 0x13a   :  { %v6467_v7 = vpop.f32.mrb[1].mxu0  ;;  %v6469_v11 = vpop.f32.mrb[1].mxu1 }
 0x13b   :  { %v3596_v12 = vpop.f32.mrb[2].mxu0  ;;  %3815 = vmatpush1.bf16.msra.mxu0 %v5846_v1  ;;  %3979 = vmatpush1.bf16.msra.mxu1 %v5849_v2  ;;  %v3719_v13 = vpop.f32.mrb[2].mxu1  ;;  %v5918_v1 = vld [vmem:[#allocation2 + $0xc70] ss:$48 sps:$4 sm:$0xff]   ;;  %v5921_v2 = vld [vmem:[#allocation2 + $0xc78] ss:$48 sps:$4 sm:$0xff]  }
 0x13c   :  { %v3597_v14 = vpop.f32.mrb[3].mxu0  ;;  %3816 = vmatprep.subr.bf16.mxu0 %v5854_v3  ;;  %3980 = vmatprep.subr.bf16.mxu1 %v5857_v4  ;;  %v3720_v18 = vpop.f32.mrb[3].mxu1  ;;  %v5926_v3 = vld [vmem:[#allocation2 + $0xcd4] ss:$48 sps:$4 sm:$0xff]   ;;  %v5929_v4 = vld [vmem:[#allocation2 + $0xcdc] ss:$48 sps:$4 sm:$0xff]  }
 0x13d   :  { %v5932_v12 = vld [vmem:[#allocation2 + $0xd34] ss:$48 sps:$4 sm:$0xff]   ;;  %v5935_v13 = vld [vmem:[#allocation2 + $0xd3c] ss:$48 sps:$4 sm:$0xff]   ;;  %v5930_v14 = vld [vmem:[#allocation2 + $0xd30] ss:$48 sps:$4 sm:$0xff]  }
 0x13e   :  { %v5941_v18 = vld [vmem:[#allocation2 + $0xd9c] ss:$48 sps:$4 sm:$0xff]  }
 0x13f   :  { %3817 = vmatpush1.bf16.msra.mxu0 %v5852_v8  ;;  %3981 = vmatpush1.bf16.msra.mxu1 %v5855_v10  ;;  %v5924_v8 = vld [vmem:[#allocation2 + $0xcd0] ss:$48 sps:$4 sm:$0xff]   ;;  %v5927_v10 = vld [vmem:[#allocation2 + $0xcd8] ss:$48 sps:$4 sm:$0xff]  }
 0x140   :  { %3818 = vmatprep.subr.bf16.mxu0 %v5860_v16  ;;  %3982 = vmatprep.subr.bf16.mxu1 %v5863_v17  ;;  %v5933_v16 = vld [vmem:[#allocation2 + $0xd38] ss:$48 sps:$4 sm:$0xff]   ;;  %v5938_v17 = vld [vmem:[#allocation2 + $0xd94] ss:$48 sps:$4 sm:$0xff]  }
 0x143   :  { %3819 = vmatpush1.bf16.msra.mxu0 %v5858_v19  ;;  %3983 = vmatpush1.bf16.msra.mxu1 %v5861_v22  ;;  %v5936_v19 = vld [vmem:[#allocation2 + $0xd90] ss:$48 sps:$4 sm:$0xff]   ;;  %v5939_v22 = vld [vmem:[#allocation2 + $0xd98] ss:$48 sps:$4 sm:$0xff]  }
 0x144   :  { %3820 = vmatprep.subr.bf16.mxu0 %v5866_v23  ;;  %3984 = vmatprep.subr.bf16.mxu1 %v5869_v24  ;;  %v5944_v23 = vld [vmem:[#allocation2 + $0xdf4] ss:$48 sps:$4 sm:$0xff]   ;;  %v5947_v24 = vld [vmem:[#allocation2 + $0xdfc] ss:$48 sps:$4 sm:$0xff]  }
 0x147   :  { %3821 = vmatpush1.bf16.msra.mxu0 %v5864_v26  ;;  %3985 = vmatpush1.bf16.msra.mxu1 %v5867_v28  ;;  %v5942_v26 = vld [vmem:[#allocation2 + $0xdf0] ss:$48 sps:$4 sm:$0xff]   ;;  %v5945_v28 = vld [vmem:[#allocation2 + $0xdf8] ss:$48 sps:$4 sm:$0xff]  }
 0x148   :  { %3822 = vmatprep.subr.bf16.mxu0 %v5872_v29  ;;  %3986 = vmatprep.subr.bf16.mxu1 %v5875_v30  ;;  %v5950_v29 = vld [vmem:[#allocation2 + $0xe54] ss:$48 sps:$4 sm:$0xff]   ;;  %v5953_v30 = vld [vmem:[#allocation2 + $0xe5c] ss:$48 sps:$4 sm:$0xff]  }
 0x14b   :  { %3823 = vmatpush1.bf16.msra.mxu0 %v5870_v31  ;;  %3987 = vmatpush1.bf16.msra.mxu1 %v5873_v32  ;;  %v5948_v32 = vld [vmem:[#allocation2 + $0xe50] ss:$48 sps:$4 sm:$0xff]  }
 0x14c   :  { %3824 = vmatprep.subr.bf16.mxu0 %v5878_v33  ;;  %3988 = vmatprep.subr.bf16.mxu1 %v5881_v9  ;;  %v5951_v33 = vld [vmem:[#allocation2 + $0xe58] ss:$48 sps:$4 sm:$0xff]  }
 0x14f   :  { %3825 = vmatpush1.bf16.msra.mxu0 %v5876_v34  ;;  %3989 = vmatpush1.bf16.msra.mxu1 %v5879_v35 }
 0x150   :  { %3826 = vmatprep.subr.bf16.mxu0 %v5884_v36  ;;  %3990 = vmatprep.subr.bf16.mxu1 %v5887_v37 }
 0x153   :  { %3827 = vmatpush1.bf16.msra.mxu0 %v5882_v38  ;;  %3991 = vmatpush1.bf16.msra.mxu1 %v5885_v39 }
 0x154   :  { %3828 = vmatprep.subr.bf16.mxu0 %v5890_v40  ;;  %3992 = vmatprep.subr.bf16.mxu1 %v5893_v41  ;;  %v5956_v41 = vld [vmem:[#allocation2 + $0xeb4] ss:$48 sps:$4 sm:$0xff]  }
 0x157   :  { %3829 = vmatpush1.bf16.msra.mxu0 %v5888_v42  ;;  %3993 = vmatpush1.bf16.msra.mxu1 %v5891_v44  ;;  %v5959_v42 = vld [vmem:[#allocation2 + $0xebc] ss:$48 sps:$4 sm:$0xff]  }
 0x158   :  { %3830 = vmatprep.subr.bf16.mxu0 %v5896_v45  ;;  %3994 = vmatprep.subr.bf16.mxu1 %v5899_v46  ;;  %v5954_v45 = vld [vmem:[#allocation2 + $0xeb0] ss:$48 sps:$4 sm:$0xff]   ;;  %v5957_v46 = vld [vmem:[#allocation2 + $0xeb8] ss:$48 sps:$4 sm:$0xff]  }
 0x15b   :  { %3831 = vmatpush1.bf16.msra.mxu0 %v5894_v47  ;;  %3995 = vmatpush1.bf16.msra.mxu1 %v5897_v48  ;;  %v5965_v47 = vld [vmem:[#allocation2 + $0xf1c] ss:$48 sps:$4 sm:$0xff]   ;;  %v5963_v48 = vld [vmem:[#allocation2 + $0xf18] ss:$48 sps:$4 sm:$0xff]  }
 0x15c   :  { %3832 = vmatprep.subr.bf16.mxu0 %v5902_v50  ;;  %3996 = vmatprep.subr.bf16.mxu1 %v5905_v51  ;;  %v5968_v50 = vld [vmem:[#allocation2 + $0xf74] ss:$48 sps:$4 sm:$0xff]   ;;  %v5971_v51 = vld [vmem:[#allocation2 + $0xf7c] ss:$48 sps:$4 sm:$0xff]  }
 0x15f   :  { %3833 = vmatpush1.bf16.msra.mxu0 %v5900_v52  ;;  %3997 = vmatpush1.bf16.msra.mxu1 %v5903_v53  ;;  %v5966_v52 = vld [vmem:[#allocation2 + $0xf70] ss:$48 sps:$4 sm:$0xff]   ;;  %v5969_v53 = vld [vmem:[#allocation2 + $0xf78] ss:$48 sps:$4 sm:$0xff]  }
 0x160   :  { %3834 = vmatprep.subr.bf16.mxu0 %v5908_v54  ;;  %3998 = vmatprep.subr.bf16.mxu1 %v5911_v55  ;;  %v5974_v54 = vld [vmem:[#allocation2 + $0xfd4] ss:$48 sps:$4 sm:$0xff]   ;;  %v5977_v55 = vld [vmem:[#allocation2 + $0xfdc] ss:$48 sps:$4 sm:$0xff]  }
 0x163   :  { %3835 = vmatpush1.bf16.msra.mxu0 %v5906_v56  ;;  %3999 = vmatpush1.bf16.msra.mxu1 %v5909_v57  ;;  %v5972_v56 = vld [vmem:[#allocation2 + $0xfd0] ss:$48 sps:$4 sm:$0xff]   ;;  %v5975_v57 = vld [vmem:[#allocation2 + $0xfd8] ss:$48 sps:$4 sm:$0xff]  }
 0x164   :  { %3886 = vmatprep.subr.bf16.mxu0 %v5914_v58  ;;  %4009 = vmatprep.subr.bf16.mxu1 %v5917_v59  ;;  %v5980_v58 = vld [vmem:[#allocation2 + $0x1034] ss:$48 sps:$4 sm:$0xff]   ;;  %v5983_v59 = vld [vmem:[#allocation2 + $0x103c] ss:$48 sps:$4 sm:$0xff]  }
 0x166   :  { %3837 = vmatmul.mubr.bf16.vlgmr.msra.gmra.mrb[16].mxu0 %v6430_v15  ;;  %4001 = vmatmul.mubr.bf16.vlgmr.msra.gmra.mrb[12].mxu1 %v6445_v25 }
 0x167   :  { %3887 = vmatpush1.bf16.msra.mxu0 %v5912_v61  ;;  %4010 = vmatpush1.bf16.msra.mxu1 %v5915_v62  ;;  %v5978_v61 = vld [vmem:[#allocation2 + $0x1030] ss:$48 sps:$4 sm:$0xff]   ;;  %v5981_v62 = vld [vmem:[#allocation2 + $0x1038] ss:$48 sps:$4 sm:$0xff]  }
 0x168   :  { %3888 = vmatprep.subr.bf16.mxu0 %v5920_v63  ;;  %4011 = vmatprep.subr.bf16.mxu1 %v5923_v0  ;;  %v5986_v63 = vld [vmem:[#allocation2 + $0x1094] ss:$48 sps:$4 sm:$0xff]   ;;  %v5989_v0 = vld [vmem:[#allocation2 + $0x109c] ss:$48 sps:$4 sm:$0xff]  }
 0x169   :  { %3918 = vmatprep.mubr.bf16.mxu0 %v6437_v21  ;;  %4041 = vmatprep.mubr.bf16.mxu1 %v6437_v21 }
 0x16b   :  { %3889 = vmatpush1.bf16.msra.mxu0 %v5918_v1  ;;  %4012 = vmatpush1.bf16.msra.mxu1 %v5921_v2  ;;  %v5984_v1 = vld [vmem:[#allocation2 + $0x1090] ss:$48 sps:$4 sm:$0xff]   ;;  %v5987_v2 = vld [vmem:[#allocation2 + $0x1098] ss:$48 sps:$4 sm:$0xff]  }
 0x16c   :  { %3890 = vmatprep.subr.bf16.mxu0 %v5926_v3  ;;  %4013 = vmatprep.subr.bf16.mxu1 %v5929_v4  ;;  %v5992_v3 = vld [vmem:[#allocation2 + $0x10f4] ss:$48 sps:$4 sm:$0xff]   ;;  %v5995_v4 = vld [vmem:[#allocation2 + $0x10fc] ss:$48 sps:$4 sm:$0xff]  }
 0x16f   :  { %3891 = vmatpush1.bf16.msra.mxu0 %v5924_v8  ;;  %4014 = vmatpush1.bf16.msra.mxu1 %v5927_v10  ;;  %v5990_v8 = vld [vmem:[#allocation2 + $0x10f0] ss:$48 sps:$4 sm:$0xff]   ;;  %v5993_v10 = vld [vmem:[#allocation2 + $0x10f8] ss:$48 sps:$4 sm:$0xff]  }
 0x170   :  { %3892 = vmatprep.subr.bf16.mxu0 %v5932_v12  ;;  %4015 = vmatprep.subr.bf16.mxu1 %v5935_v13  ;;  %v5998_v12 = vld [vmem:[#allocation2 + $0x1154] ss:$48 sps:$4 sm:$0xff]   ;;  %v6001_v13 = vld [vmem:[#allocation2 + $0x115c] ss:$48 sps:$4 sm:$0xff]  }
 0x173   :  { %3893 = vmatpush1.bf16.msra.mxu0 %v5930_v14  ;;  %4016 = vmatpush1.bf16.msra.mxu1 %v5933_v16  ;;  %v5996_v14 = vld [vmem:[#allocation2 + $0x1150] ss:$48 sps:$4 sm:$0xff]   ;;  %v5999_v16 = vld [vmem:[#allocation2 + $0x1158] ss:$48 sps:$4 sm:$0xff]  }
 0x174   :  { %3894 = vmatprep.subr.bf16.mxu0 %v5938_v17  ;;  %4017 = vmatprep.subr.bf16.mxu1 %v5941_v18  ;;  %v6004_v17 = vld [vmem:[#allocation2 + $0x11b4] ss:$48 sps:$4 sm:$0xff]   ;;  %v6007_v18 = vld [vmem:[#allocation2 + $0x11bc] ss:$48 sps:$4 sm:$0xff]  }
 0x177   :  { %3895 = vmatpush1.bf16.msra.mxu0 %v5936_v19  ;;  %4018 = vmatpush1.bf16.msra.mxu1 %v5939_v22  ;;  %v6002_v19 = vld [vmem:[#allocation2 + $0x11b0] ss:$48 sps:$4 sm:$0xff]   ;;  %v6005_v22 = vld [vmem:[#allocation2 + $0x11b8] ss:$48 sps:$4 sm:$0xff]  }
 0x178   :  { %3896 = vmatprep.subr.bf16.mxu0 %v5944_v23  ;;  %4019 = vmatprep.subr.bf16.mxu1 %v5947_v24  ;;  %v6010_v23 = vld [vmem:[#allocation2 + $0x24] ss:$48 sps:$4 sm:$0xff]   ;;  %v6013_v24 = vld [vmem:[#allocation2 + $0x2c] ss:$48 sps:$4 sm:$0xff]  }
 0x179   :  { %v3633_v31 = vpop.f32.mrb[4].mxu0  ;;  %v6475_v9 = vpop.f32.mrb[4].mxu1 }
 0x17a   :  { %v6478_v34 = vadd.f32 %v3633_v31, %v6463_v5  ;;  %v3635_v35 = vpop.f32.mrb[5].mxu0  ;;  %v6480_v36 = vpop.f32.mrb[5].mxu1  ;;  %v5962_v5 = vld [vmem:[#allocation2 + $0xf14] ss:$48 sps:$4 sm:$0xff]   ;;  %v6014_v31 = vld [vmem:[#allocation2 + $0x80] ss:$48 sps:$4 sm:$0xff]  }
 0x17b   :  { %v6483_v37 = vadd.f32 %v3635_v35, %v6467_v7  ;;  %v3637_v38 = vpop.f32.mrb[6].mxu0  ;;  %3897 = vmatpush1.bf16.msra.mxu0 %v5942_v26  ;;  %4020 = vmatpush1.bf16.msra.mxu1 %v5945_v28  ;;  %v3801_v39 = vpop.f32.mrb[6].mxu1  ;;  %v5960_v7 = vld [vmem:[#allocation2 + $0xf10] ss:$48 sps:$4 sm:$0xff]   ;;  %v6011_v28 = vld [vmem:[#allocation2 + $0x28] ss:$48 sps:$4 sm:$0xff]  }
 0x17c   :  { %v3638_v40 = vpop.f32.mrb[7].mxu0  ;;  %3898 = vmatprep.subr.bf16.mxu0 %v5950_v29  ;;  %4021 = vmatprep.subr.bf16.mxu1 %v5953_v30  ;;  %v3802_v44 = vpop.f32.mrb[7].mxu1  ;;  %v6008_v26 = vld [vmem:[#allocation2 + $0x20] ss:$48 sps:$4 sm:$0xff]   ;;  %v6016_v29 = vld [vmem:[#allocation2 + $0x84] ss:$48 sps:$4 sm:$0xff]  }
 0x17d   :  { %v6019_v30 = vld [vmem:[#allocation2 + $0x8c] ss:$48 sps:$4 sm:$0xff]   ;;  %v6020_v38 = vld [vmem:[#allocation2 + $0xe0] ss:$48 sps:$4 sm:$0xff]   ;;  %v6023_v39 = vld [vmem:[#allocation2 + $0xe8] ss:$48 sps:$4 sm:$0xff]  }
 0x17e   :  { %v6025_v35 = vld [vmem:[#allocation2 + $0xec] ss:$48 sps:$4 sm:$0xff]   ;;  %v6028_v40 = vld [vmem:[#allocation2 + $0x144] ss:$48 sps:$4 sm:$0xff]   ;;  %v6029_v44 = vld [vmem:[#allocation2 + $0x148] ss:$48 sps:$4 sm:$0xff]  }
 0x17f   :  { %3899 = vmatpush1.bf16.msra.mxu0 %v5948_v32  ;;  %4022 = vmatpush1.bf16.msra.mxu1 %v5951_v33  ;;  %v6017_v32 = vld [vmem:[#allocation2 + $0x88] ss:$48 sps:$4 sm:$0xff]   ;;  %v6022_v33 = vld [vmem:[#allocation2 + $0xe4] ss:$48 sps:$4 sm:$0xff]  }
 0x180   :  { %3900 = vmatprep.subr.bf16.mxu0 %v5956_v41  ;;  %4023 = vmatprep.subr.bf16.mxu1 %v5959_v42  ;;  %v6031_v41 = vld [vmem:[#allocation2 + $0x14c] ss:$48 sps:$4 sm:$0xff]   ;;  %v6026_v42 = vld [vmem:[#allocation2 + $0x140] ss:$48 sps:$4 sm:$0xff]  }
 0x183   :  { %3901 = vmatpush1.bf16.msra.mxu0 %v5954_v45  ;;  %4024 = vmatpush1.bf16.msra.mxu1 %v5957_v46  ;;  %v6034_v45 = vld [vmem:[#allocation2 + $0x1a4] ss:$48 sps:$4 sm:$0xff]   ;;  %v6037_v46 = vld [vmem:[#allocation2 + $0x1ac] ss:$48 sps:$4 sm:$0xff]  }
 0x184   :  { %3902 = vmatprep.subr.bf16.mxu0 %v5962_v5  ;;  %4025 = vmatprep.subr.bf16.mxu1 %v5965_v47  ;;  %v6032_v5 = vld [vmem:[#allocation2 + $0x1a0] ss:$48 sps:$4 sm:$0xff]   ;;  %v6040_v47 = vld [vmem:[#allocation2 + $0x204] ss:$48 sps:$4 sm:$0xff]  }
 0x187   :  { %3903 = vmatpush1.bf16.msra.mxu0 %v5960_v7  ;;  %4026 = vmatpush1.bf16.msra.mxu1 %v5963_v48  ;;  %v6043_v7 = vld [vmem:[#allocation2 + $0x20c] ss:$48 sps:$4 sm:$0xff]   ;;  %v6038_v48 = vld [vmem:[#allocation2 + $0x200] ss:$48 sps:$4 sm:$0xff]  }
 0x188   :  { %3904 = vmatprep.subr.bf16.mxu0 %v5968_v50  ;;  %4027 = vmatprep.subr.bf16.mxu1 %v5971_v51  ;;  %v6041_v50 = vld [vmem:[#allocation2 + $0x208] ss:$48 sps:$4 sm:$0xff]   ;;  %v6046_v51 = vld [vmem:[#allocation2 + $0x264] ss:$48 sps:$4 sm:$0xff]  }
 0x18b   :  { %3905 = vmatpush1.bf16.msra.mxu0 %v5966_v52  ;;  %4028 = vmatpush1.bf16.msra.mxu1 %v5969_v53  ;;  %v6049_v52 = vld [vmem:[#allocation2 + $0x26c] ss:$48 sps:$4 sm:$0xff]  }
 0x18c   :  { %3906 = vmatprep.subr.bf16.mxu0 %v5974_v54  ;;  %4029 = vmatprep.subr.bf16.mxu1 %v5977_v55 }
 0x18f   :  { %3907 = vmatpush1.bf16.msra.mxu0 %v5972_v56  ;;  %4030 = vmatpush1.bf16.msra.mxu1 %v5975_v57 }
 0x190   :  { %3908 = vmatprep.subr.bf16.mxu0 %v5980_v58  ;;  %4031 = vmatprep.subr.bf16.mxu1 %v5983_v59 }
 0x193   :  { %3909 = vmatpush1.bf16.msra.mxu0 %v5978_v61  ;;  %4032 = vmatpush1.bf16.msra.mxu1 %v5981_v62  ;;  %v6044_v61 = vld [vmem:[#allocation2 + $0x260] ss:$48 sps:$4 sm:$0xff]   ;;  %v6047_v62 = vld [vmem:[#allocation2 + $0x268] ss:$48 sps:$4 sm:$0xff]  }
 0x194   :  { %3910 = vmatprep.subr.bf16.mxu0 %v5986_v63  ;;  %4033 = vmatprep.subr.bf16.mxu1 %v5989_v0 }
 0x197   :  { %3911 = vmatpush1.bf16.msra.mxu0 %v5984_v1  ;;  %4034 = vmatpush1.bf16.msra.mxu1 %v5987_v2  ;;  %v6052_v1 = vld [vmem:[#allocation2 + $0x2c4] ss:$48 sps:$4 sm:$0xff]   ;;  %v6055_v2 = vld [vmem:[#allocation2 + $0x2cc] ss:$48 sps:$4 sm:$0xff]  }
 0x198   :  { %3912 = vmatprep.subr.bf16.mxu0 %v5992_v3  ;;  %4035 = vmatprep.subr.bf16.mxu1 %v5995_v4  ;;  %v6053_v4 = vld [vmem:[#allocation2 + $0x2c8] ss:$48 sps:$4 sm:$0xff]  }
 0x19b   :  { %3913 = vmatpush1.bf16.msra.mxu0 %v5990_v8  ;;  %4036 = vmatpush1.bf16.msra.mxu1 %v5993_v10  ;;  %v6061_v8 = vld [vmem:[#allocation2 + $0x32c] ss:$48 sps:$4 sm:$0xff]   ;;  %v6056_v10 = vld [vmem:[#allocation2 + $0x320] ss:$48 sps:$4 sm:$0xff]  }
 0x19c   :  { %3914 = vmatprep.subr.bf16.mxu0 %v5998_v12  ;;  %4037 = vmatprep.subr.bf16.mxu1 %v6001_v13  ;;  %v6059_v12 = vld [vmem:[#allocation2 + $0x328] ss:$48 sps:$4 sm:$0xff]   ;;  %v6064_v13 = vld [vmem:[#allocation2 + $0x384] ss:$48 sps:$4 sm:$0xff]  }
 0x19f   :  { %3915 = vmatpush1.bf16.msra.mxu0 %v5996_v14  ;;  %4038 = vmatpush1.bf16.msra.mxu1 %v5999_v16  ;;  %v6067_v14 = vld [vmem:[#allocation2 + $0x38c] ss:$48 sps:$4 sm:$0xff]   ;;  %v6062_v16 = vld [vmem:[#allocation2 + $0x380] ss:$48 sps:$4 sm:$0xff]  }
 0x1a0   :  { %3916 = vmatprep.subr.bf16.mxu0 %v6004_v17  ;;  %4039 = vmatprep.subr.bf16.mxu1 %v6007_v18  ;;  %v6065_v17 = vld [vmem:[#allocation2 + $0x388] ss:$48 sps:$4 sm:$0xff]   ;;  %v6070_v18 = vld [vmem:[#allocation2 + $0x3e4] ss:$48 sps:$4 sm:$0xff]  }
 0x1a3   :  { %3917 = vmatpush1.bf16.msra.mxu0 %v6002_v19  ;;  %4040 = vmatpush1.bf16.msra.mxu1 %v6005_v22  ;;  %v6073_v19 = vld [vmem:[#allocation2 + $0x3ec] ss:$48 sps:$4 sm:$0xff]   ;;  %v6068_v22 = vld [vmem:[#allocation2 + $0x3e0] ss:$48 sps:$4 sm:$0xff]  }
 0x1a4   :  { %4050 = vmatprep.subr.bf16.mxu0 %v6010_v23  ;;  %4173 = vmatprep.subr.bf16.mxu1 %v6013_v24  ;;  %v6071_v23 = vld [vmem:[#allocation2 + $0x3e8] ss:$48 sps:$4 sm:$0xff]   ;;  %v6076_v24 = vld [vmem:[#allocation2 + $0x444] ss:$48 sps:$4 sm:$0xff]  }
 0x1a6   :  { %3919 = vmatmul.mubr.bf16.vlgmr.msra.gmra.mrb[20].mxu0 %v6449_v27  ;;  %4042 = vmatmul.mubr.bf16.vlgmr.msra.gmra.mrb[12].mxu1 %v6449_v27 }
 0x1a7   :  { %4051 = vmatpush1.bf16.msra.mxu0 %v6008_v26  ;;  %4174 = vmatpush1.bf16.msra.mxu1 %v6011_v28  ;;  %v6079_v26 = vld [vmem:[#allocation2 + $0x44c] ss:$48 sps:$4 sm:$0xff]   ;;  %v6074_v28 = vld [vmem:[#allocation2 + $0x440] ss:$48 sps:$4 sm:$0xff]  }
 0x1a8   :  { %4052 = vmatprep.subr.bf16.mxu0 %v6016_v29  ;;  %4175 = vmatprep.subr.bf16.mxu1 %v6019_v30  ;;  %v6077_v29 = vld [vmem:[#allocation2 + $0x448] ss:$48 sps:$4 sm:$0xff]   ;;  %v6082_v30 = vld [vmem:[#allocation2 + $0x4a4] ss:$48 sps:$4 sm:$0xff]  }
 0x1a9   :  { %4082 = vmatprep.mubr.bf16.mxu0 %v6420_v60  ;;  %4205 = vmatprep.mubr.bf16.mxu1 %v6420_v60  ;;  %v6035_v60 = vld [vmem:[#allocation2 + $0x1a8] ss:$48 sps:$4 sm:$0xff]  }
 0x1ab   :  { %4053 = vmatpush1.bf16.msra.mxu0 %v6014_v31  ;;  %4176 = vmatpush1.bf16.msra.mxu1 %v6017_v32  ;;  %v6085_v31 = vld [vmem:[#allocation2 + $0x4ac] ss:$48 sps:$4 sm:$0xff]   ;;  %v6080_v32 = vld [vmem:[#allocation2 + $0x4a0] ss:$48 sps:$4 sm:$0xff]  }
 0x1ac   :  { %4054 = vmatprep.subr.bf16.mxu0 %v6022_v33  ;;  %4177 = vmatprep.subr.bf16.mxu1 %v6025_v35  ;;  %v6083_v33 = vld [vmem:[#allocation2 + $0x4a8] ss:$48 sps:$4 sm:$0xff]   ;;  %v6088_v35 = vld [vmem:[#allocation2 + $0x504] ss:$48 sps:$4 sm:$0xff]  }
 0x1af   :  { %4055 = vmatpush1.bf16.msra.mxu0 %v6020_v38  ;;  %4178 = vmatpush1.bf16.msra.mxu1 %v6023_v39  ;;  %v6091_v38 = vld [vmem:[#allocation2 + $0x50c] ss:$48 sps:$4 sm:$0xff]   ;;  %v6086_v39 = vld [vmem:[#allocation2 + $0x500] ss:$48 sps:$4 sm:$0xff]  }
 0x1b0   :  { %4056 = vmatprep.subr.bf16.mxu0 %v6028_v40  ;;  %4179 = vmatprep.subr.bf16.mxu1 %v6031_v41  ;;  %v6089_v40 = vld [vmem:[#allocation2 + $0x508] ss:$48 sps:$4 sm:$0xff]   ;;  %v6094_v41 = vld [vmem:[#allocation2 + $0x564] ss:$48 sps:$4 sm:$0xff]  }
 0x1b3   :  { %4057 = vmatpush1.bf16.msra.mxu0 %v6026_v42  ;;  %4180 = vmatpush1.bf16.msra.mxu1 %v6029_v44  ;;  %v6097_v42 = vld [vmem:[#allocation2 + $0x56c] ss:$48 sps:$4 sm:$0xff]   ;;  %v6092_v44 = vld [vmem:[#allocation2 + $0x560] ss:$48 sps:$4 sm:$0xff]  }
 0x1b4   :  { %4058 = vmatprep.subr.bf16.mxu0 %v6034_v45  ;;  %4181 = vmatprep.subr.bf16.mxu1 %v6037_v46  ;;  %v6095_v45 = vld [vmem:[#allocation2 + $0x568] ss:$48 sps:$4 sm:$0xff]   ;;  %v6100_v46 = vld [vmem:[#allocation2 + $0x5c4] ss:$48 sps:$4 sm:$0xff]  }
 0x1b7   :  { %4059 = vmatpush1.bf16.msra.mxu0 %v6032_v5  ;;  %4182 = vmatpush1.bf16.msra.mxu1 %v6035_v60  ;;  %v6103_v5 = vld [vmem:[#allocation2 + $0x5cc] ss:$48 sps:$4 sm:$0xff]   ;;  %v6098_v60 = vld [vmem:[#allocation2 + $0x5c0] ss:$48 sps:$4 sm:$0xff]  }
 0x1b8   :  { %4060 = vmatprep.subr.bf16.mxu0 %v6040_v47  ;;  %4183 = vmatprep.subr.bf16.mxu1 %v6043_v7  ;;  %v6101_v47 = vld [vmem:[#allocation2 + $0x5c8] ss:$48 sps:$4 sm:$0xff]   ;;  %v6106_v7 = vld [vmem:[#allocation2 + $0x624] ss:$48 sps:$4 sm:$0xff]  }
 0x1b9   :  { %v3674_v53 = vpop.f32.mrb[8].mxu0  ;;  %v6489_v54 = vpop.f32.mrb[8].mxu1 }
 0x1ba   :  { %v6492_v55 = vadd.f32 %v3674_v53, %v6478_v34  ;;  %v3676_v56 = vpop.f32.mrb[9].mxu0  ;;  %v6494_v57 = vpop.f32.mrb[9].mxu1  ;;  %v6050_v34 = vld [vmem:[#allocation2 + $0x2c0] ss:$48 sps:$4 sm:$0xff]   ;;  %v6115_v53 = vld [vmem:[#allocation2 + $0x68c] ss:$48 sps:$4 sm:$0xff]  }
 0x1bb   :  { %v6497_v58 = vadd.f32 %v3676_v56, %v6483_v37  ;;  %v3678_v59 = vpop.f32.mrb[10].mxu0  ;;  %4061 = vmatpush1.bf16.msra.mxu0 %v6038_v48  ;;  %4184 = vmatpush1.bf16.msra.mxu1 %v6041_v50  ;;  %v3883_v63 = vpop.f32.mrb[10].mxu1  ;;  %v6058_v37 = vld [vmem:[#allocation2 + $0x324] ss:$48 sps:$4 sm:$0xff]   ;;  %v6109_v48 = vld [vmem:[#allocation2 + $0x62c] ss:$48 sps:$4 sm:$0xff]  }
 0x1bc   :  { %v3679_v0 = vpop.f32.mrb[11].mxu0  ;;  %4062 = vmatprep.subr.bf16.mxu0 %v6046_v51  ;;  %4185 = vmatprep.subr.bf16.mxu1 %v6049_v52  ;;  %v3884_v3 = vpop.f32.mrb[11].mxu1  ;;  %v6104_v50 = vld [vmem:[#allocation2 + $0x620] ss:$48 sps:$4 sm:$0xff]   ;;  %v6107_v51 = vld [vmem:[#allocation2 + $0x628] ss:$48 sps:$4 sm:$0xff]  }
 0x1bd   :  { %v6112_v52 = vld [vmem:[#allocation2 + $0x684] ss:$48 sps:$4 sm:$0xff]   ;;  %v6110_v56 = vld [vmem:[#allocation2 + $0x680] ss:$48 sps:$4 sm:$0xff]   ;;  %v6113_v59 = vld [vmem:[#allocation2 + $0x688] ss:$48 sps:$4 sm:$0xff]  }
 0x1be   :  { %v6116_v63 = vld [vmem:[#allocation2 + $0x6e0] ss:$48 sps:$4 sm:$0xff]   ;;  %v6119_v0 = vld [vmem:[#allocation2 + $0x6e8] ss:$48 sps:$4 sm:$0xff]  }
 0x1bf   :  { %4063 = vmatpush1.bf16.msra.mxu0 %v6044_v61  ;;  %4186 = vmatpush1.bf16.msra.mxu1 %v6047_v62  ;;  %v6118_v61 = vld [vmem:[#allocation2 + $0x6e4] ss:$48 sps:$4 sm:$0xff]   ;;  %v6121_v62 = vld [vmem:[#allocation2 + $0x6ec] ss:$48 sps:$4 sm:$0xff]   ;;  %v6125_v3 = vld [vmem:[#allocation2 + $0x748] ss:$48 sps:$4 sm:$0xff]  }
 0x1c0   :  { %4064 = vmatprep.subr.bf16.mxu0 %v6052_v1  ;;  %4187 = vmatprep.subr.bf16.mxu1 %v6055_v2  ;;  %v6124_v1 = vld [vmem:[#allocation2 + $0x744] ss:$48 sps:$4 sm:$0xff]   ;;  %v6122_v2 = vld [vmem:[#allocation2 + $0x740] ss:$48 sps:$4 sm:$0xff]  }
 0x1c3   :  { %4065 = vmatpush1.bf16.msra.mxu0 %v6050_v34  ;;  %4188 = vmatpush1.bf16.msra.mxu1 %v6053_v4  ;;  %v6130_v34 = vld [vmem:[#allocation2 + $0x7a4] ss:$48 sps:$4 sm:$0xff]   ;;  %v6133_v4 = vld [vmem:[#allocation2 + $0x7ac] ss:$48 sps:$4 sm:$0xff]  }
 0x1c4   :  { %4066 = vmatprep.subr.bf16.mxu0 %v6058_v37  ;;  %4189 = vmatprep.subr.bf16.mxu1 %v6061_v8  ;;  %v6128_v37 = vld [vmem:[#allocation2 + $0x7a0] ss:$48 sps:$4 sm:$0xff]   ;;  %v6136_v8 = vld [vmem:[#allocation2 + $0x804] ss:$48 sps:$4 sm:$0xff]  }
 0x1c7   :  { %4067 = vmatpush1.bf16.msra.mxu0 %v6056_v10  ;;  %4190 = vmatpush1.bf16.msra.mxu1 %v6059_v12  ;;  %v6139_v10 = vld [vmem:[#allocation2 + $0x80c] ss:$48 sps:$4 sm:$0xff]   ;;  %v6134_v12 = vld [vmem:[#allocation2 + $0x800] ss:$48 sps:$4 sm:$0xff]  }
 0x1c8   :  { %4068 = vmatprep.subr.bf16.mxu0 %v6064_v13  ;;  %4191 = vmatprep.subr.bf16.mxu1 %v6067_v14  ;;  %v6137_v13 = vld [vmem:[#allocation2 + $0x808] ss:$48 sps:$4 sm:$0xff]   ;;  %v6142_v14 = vld [vmem:[#allocation2 + $0x864] ss:$48 sps:$4 sm:$0xff]  }
 0x1cb   :  { %4069 = vmatpush1.bf16.msra.mxu0 %v6062_v16  ;;  %4192 = vmatpush1.bf16.msra.mxu1 %v6065_v17  ;;  %v6145_v16 = vld [vmem:[#allocation2 + $0x86c] ss:$48 sps:$4 sm:$0xff]  }
 0x1cc   :  { %4070 = vmatprep.subr.bf16.mxu0 %v6070_v18  ;;  %4193 = vmatprep.subr.bf16.mxu1 %v6073_v19 }
 0x1cf   :  { %4071 = vmatpush1.bf16.msra.mxu0 %v6068_v22  ;;  %4194 = vmatpush1.bf16.msra.mxu1 %v6071_v23 }
 0x1d0   :  { %4072 = vmatprep.subr.bf16.mxu0 %v6076_v24  ;;  %4195 = vmatprep.subr.bf16.mxu1 %v6079_v26  ;;  %v6140_v24 = vld [vmem:[#allocation2 + $0x860] ss:$48 sps:$4 sm:$0xff]   ;;  %v6143_v26 = vld [vmem:[#allocation2 + $0x868] ss:$48 sps:$4 sm:$0xff]  }
 0x1d3   :  { %4073 = vmatpush1.bf16.msra.mxu0 %v6074_v28  ;;  %4196 = vmatpush1.bf16.msra.mxu1 %v6077_v29 }
 0x1d4   :  { %4074 = vmatprep.subr.bf16.mxu0 %v6082_v30  ;;  %4197 = vmatprep.subr.bf16.mxu1 %v6085_v31  ;;  %v6148_v30 = vld [vmem:[#allocation2 + $0x8c4] ss:$48 sps:$4 sm:$0xff]   ;;  %v6151_v31 = vld [vmem:[#allocation2 + $0x8cc] ss:$48 sps:$4 sm:$0xff]  }
 0x1d7   :  { %4075 = vmatpush1.bf16.msra.mxu0 %v6080_v32  ;;  %4198 = vmatpush1.bf16.msra.mxu1 %v6083_v33  ;;  %v6154_v33 = vld [vmem:[#allocation2 + $0x924] ss:$48 sps:$4 sm:$0xff]  }
 0x1d8   :  { %4076 = vmatprep.subr.bf16.mxu0 %v6088_v35  ;;  %4199 = vmatprep.subr.bf16.mxu1 %v6091_v38  ;;  %v6157_v35 = vld [vmem:[#allocation2 + $0x92c] ss:$48 sps:$4 sm:$0xff]   ;;  %v6155_v38 = vld [vmem:[#allocation2 + $0x928] ss:$48 sps:$4 sm:$0xff]  }
 0x1db   :  { %4077 = vmatpush1.bf16.msra.mxu0 %v6086_v39  ;;  %4200 = vmatpush1.bf16.msra.mxu1 %v6089_v40  ;;  %v6160_v39 = vld [vmem:[#allocation2 + $0x984] ss:$48 sps:$4 sm:$0xff]   ;;  %v6163_v40 = vld [vmem:[#allocation2 + $0x98c] ss:$48 sps:$4 sm:$0xff]  }
 0x1dc   :  { %4078 = vmatprep.subr.bf16.mxu0 %v6094_v41  ;;  %4201 = vmatprep.subr.bf16.mxu1 %v6097_v42  ;;  %v6161_v41 = vld [vmem:[#allocation2 + $0x988] ss:$48 sps:$4 sm:$0xff]   ;;  %v6166_v42 = vld [vmem:[#allocation2 + $0x9e4] ss:$48 sps:$4 sm:$0xff]  }
 0x1df   :  { %4079 = vmatpush1.bf16.msra.mxu0 %v6092_v44  ;;  %4202 = vmatpush1.bf16.msra.mxu1 %v6095_v45  ;;  %v6169_v44 = vld [vmem:[#allocation2 + $0x9ec] ss:$48 sps:$4 sm:$0xff]   ;;  %v6164_v45 = vld [vmem:[#allocation2 + $0x9e0] ss:$48 sps:$4 sm:$0xff]  }
 0x1e0   :  { %4080 = vmatprep.subr.bf16.mxu0 %v6100_v46  ;;  %4203 = vmatprep.subr.bf16.mxu1 %v6103_v5  ;;  %v6167_v46 = vld [vmem:[#allocation2 + $0x9e8] ss:$48 sps:$4 sm:$0xff]   ;;  %v6172_v5 = vld [vmem:[#allocation2 + $0xa44] ss:$48 sps:$4 sm:$0xff]  }
 0x1e3   :  { %4081 = vmatpush1.bf16.msra.mxu0 %v6098_v60  ;;  %4204 = vmatpush1.bf16.msra.mxu1 %v6101_v47  ;;  %v6175_v60 = vld [vmem:[#allocation2 + $0xa4c] ss:$48 sps:$4 sm:$0xff]   ;;  %v6170_v47 = vld [vmem:[#allocation2 + $0xa40] ss:$48 sps:$4 sm:$0xff]  }
 0x1e4   :  { %4091 = vmatprep.subr.bf16.mxu0 %v6106_v7  ;;  %4214 = vmatprep.subr.bf16.mxu1 %v6109_v48  ;;  %v6173_v7 = vld [vmem:[#allocation2 + $0xa48] ss:$48 sps:$4 sm:$0xff]   ;;  %v6178_v48 = vld [vmem:[#allocation2 + $0xaa4] ss:$48 sps:$4 sm:$0xff]  }
 0x1e6   :  { %4083 = vmatmul.mubr.bf16.vlgmr.msra.gmra.mrb[24].mxu0 %v6430_v15  ;;  %4206 = vmatmul.mubr.bf16.vlgmr.msra.gmra.mrb[16].mxu1 %v6430_v15  ;;  %v6127_v15 = vld [vmem:[#allocation2 + $0x74c] ss:$48 sps:$4 sm:$0xff]  }
 0x1e7   :  { %4092 = vmatpush1.bf16.msra.mxu0 %v6104_v50  ;;  %4215 = vmatpush1.bf16.msra.mxu1 %v6107_v51  ;;  %v6181_v50 = vld [vmem:[#allocation2 + $0xaac] ss:$48 sps:$4 sm:$0xff]   ;;  %v6176_v51 = vld [vmem:[#allocation2 + $0xaa0] ss:$48 sps:$4 sm:$0xff]  }
 0x1e8   :  { %4093 = vmatprep.subr.bf16.mxu0 %v6112_v52  ;;  %4216 = vmatprep.subr.bf16.mxu1 %v6115_v53  ;;  %v6179_v52 = vld [vmem:[#allocation2 + $0xaa8] ss:$48 sps:$4 sm:$0xff]   ;;  %v6184_v53 = vld [vmem:[#allocation2 + $0xb04] ss:$48 sps:$4 sm:$0xff]  }
 0x1e9   :  { %4123 = vmatprep.mubr.bf16.mxu0 %v6434_v20  ;;  %4246 = vmatprep.mubr.bf16.mxu1 %v6434_v20  ;;  %v6131_v20 = vld [vmem:[#allocation2 + $0x7a8] ss:$48 sps:$4 sm:$0xff]  }
 0x1eb   :  { %4094 = vmatpush1.bf16.msra.mxu0 %v6110_v56  ;;  %4217 = vmatpush1.bf16.msra.mxu1 %v6113_v59  ;;  %v6187_v56 = vld [vmem:[#allocation2 + $0xb0c] ss:$48 sps:$4 sm:$0xff]   ;;  %v6182_v59 = vld [vmem:[#allocation2 + $0xb00] ss:$48 sps:$4 sm:$0xff]  }
 0x1ec   :  { %4095 = vmatprep.subr.bf16.mxu0 %v6118_v61  ;;  %4218 = vmatprep.subr.bf16.mxu1 %v6121_v62  ;;  %v6185_v61 = vld [vmem:[#allocation2 + $0xb08] ss:$48 sps:$4 sm:$0xff]   ;;  %v6190_v62 = vld [vmem:[#allocation2 + $0xb64] ss:$48 sps:$4 sm:$0xff]  }
 0x1ef   :  { %4096 = vmatpush1.bf16.msra.mxu0 %v6116_v63  ;;  %4219 = vmatpush1.bf16.msra.mxu1 %v6119_v0  ;;  %v6193_v63 = vld [vmem:[#allocation2 + $0xb6c] ss:$48 sps:$4 sm:$0xff]   ;;  %v6188_v0 = vld [vmem:[#allocation2 + $0xb60] ss:$48 sps:$4 sm:$0xff]  }
 0x1f0   :  { %4097 = vmatprep.subr.bf16.mxu0 %v6124_v1  ;;  %4220 = vmatprep.subr.bf16.mxu1 %v6127_v15  ;;  %v6191_v1 = vld [vmem:[#allocation2 + $0xb68] ss:$48 sps:$4 sm:$0xff]   ;;  %v6196_v15 = vld [vmem:[#allocation2 + $0xbc4] ss:$48 sps:$4 sm:$0xff]  }
 0x1f3   :  { %4098 = vmatpush1.bf16.msra.mxu0 %v6122_v2  ;;  %4221 = vmatpush1.bf16.msra.mxu1 %v6125_v3  ;;  %v6199_v2 = vld [vmem:[#allocation2 + $0xbcc] ss:$48 sps:$4 sm:$0xff]   ;;  %v6194_v3 = vld [vmem:[#allocation2 + $0xbc0] ss:$48 sps:$4 sm:$0xff]  }
 0x1f4   :  { %4099 = vmatprep.subr.bf16.mxu0 %v6130_v34  ;;  %4222 = vmatprep.subr.bf16.mxu1 %v6133_v4  ;;  %v6197_v34 = vld [vmem:[#allocation2 + $0xbc8] ss:$48 sps:$4 sm:$0xff]   ;;  %v6202_v4 = vld [vmem:[#allocation2 + $0xc24] ss:$48 sps:$4 sm:$0xff]  }
 0x1f7   :  { %4100 = vmatpush1.bf16.msra.mxu0 %v6128_v37  ;;  %4223 = vmatpush1.bf16.msra.mxu1 %v6131_v20  ;;  %v6205_v37 = vld [vmem:[#allocation2 + $0xc2c] ss:$48 sps:$4 sm:$0xff]   ;;  %v6200_v20 = vld [vmem:[#allocation2 + $0xc20] ss:$48 sps:$4 sm:$0xff]  }
 0x1f8   :  { %4101 = vmatprep.subr.bf16.mxu0 %v6136_v8  ;;  %4224 = vmatprep.subr.bf16.mxu1 %v6139_v10  ;;  %v6203_v8 = vld [vmem:[#allocation2 + $0xc28] ss:$48 sps:$4 sm:$0xff]   ;;  %v6208_v10 = vld [vmem:[#allocation2 + $0xc84] ss:$48 sps:$4 sm:$0xff]  }
 0x1f9   :  { %v3756_v17 = vpop.f32.mrb[12].mxu0 }
 0x1fa   :  { %v3757_v18 = vadd.f32 %v3756_v17, %v6465_v6  ;;  %v3758_v19 = vpop.f32.mrb[13].mxu0  ;;  %v6146_v6 = vld [vmem:[#allocation2 + $0x8c0] ss:$48 sps:$4 sm:$0xff]   ;;  %v6217_v17 = vld [vmem:[#allocation2 + $0xcec] ss:$48 sps:$4 sm:$0xff]  }
 0x1fb   :  { %v3759_v22 = vadd.f32 %v3758_v19, %v6469_v11  ;;  %v3760_v23 = vpop.f32.mrb[14].mxu0  ;;  %4102 = vmatpush1.bf16.msra.mxu0 %v6134_v12  ;;  %4225 = vmatpush1.bf16.msra.mxu1 %v6137_v13  ;;  %v6149_v11 = vld [vmem:[#allocation2 + $0x8c8] ss:$48 sps:$4 sm:$0xff]   ;;  %v6211_v12 = vld [vmem:[#allocation2 + $0xc8c] ss:$48 sps:$4 sm:$0xff]  }
 0x1fc   :  { %v6506_v28 = vadd.f32 %v6475_v9, %v3757_v18  ;;  %v3761_v29 = vpop.f32.mrb[15].mxu0  ;;  %4103 = vmatprep.subr.bf16.mxu0 %v6142_v14  ;;  %4226 = vmatprep.subr.bf16.mxu1 %v6145_v16  ;;  %v6152_v9 = vld [vmem:[#allocation2 + $0x920] ss:$48 sps:$4 sm:$0xff]   ;;  %v6209_v14 = vld [vmem:[#allocation2 + $0xc88] ss:$48 sps:$4 sm:$0xff]  }
 0x1fd   :  { %v6509_v32 = vadd.f32 %v6480_v36, %v3759_v22  ;;  %v6158_v36 = vld [vmem:[#allocation2 + $0x980] ss:$48 sps:$4 sm:$0xff]   ;;  %v6214_v16 = vld [vmem:[#allocation2 + $0xce4] ss:$48 sps:$4 sm:$0xff]   ;;  %v6215_v19 = vld [vmem:[#allocation2 + $0xce8] ss:$48 sps:$4 sm:$0xff]  }
 0x1fe   :  { %v6206_v13 = vld [vmem:[#allocation2 + $0xc80] ss:$48 sps:$4 sm:$0xff]   ;;  %v6220_v22 = vld [vmem:[#allocation2 + $0xd44] ss:$48 sps:$4 sm:$0xff]   ;;  %v6229_v29 = vld [vmem:[#allocation2 + $0xdac] ss:$48 sps:$4 sm:$0xff]  }
 0x1ff   :  { %4104 = vmatpush1.bf16.msra.mxu0 %v6140_v24  ;;  %4227 = vmatpush1.bf16.msra.mxu1 %v6143_v26  ;;  %v6212_v18 = vld [vmem:[#allocation2 + $0xce0] ss:$48 sps:$4 sm:$0xff]   ;;  %v6221_v24 = vld [vmem:[#allocation2 + $0xd48] ss:$48 sps:$4 sm:$0xff]   ;;  %v6226_v26 = vld [vmem:[#allocation2 + $0xda4] ss:$48 sps:$4 sm:$0xff]  }
 0x200   :  { %4105 = vmatprep.subr.bf16.mxu0 %v6148_v30  ;;  %4228 = vmatprep.subr.bf16.mxu1 %v6151_v31  ;;  %v6218_v23 = vld [vmem:[#allocation2 + $0xd40] ss:$48 sps:$4 sm:$0xff]   ;;  %v6232_v31 = vld [vmem:[#allocation2 + $0xe04] ss:$48 sps:$4 sm:$0xff]  }
 0x201   :  { %v6224_v30 = vld [vmem:[#allocation2 + $0xda0] ss:$48 sps:$4 sm:$0xff]  }
 0x203   :  { %4106 = vmatpush1.bf16.msra.mxu0 %v6146_v6  ;;  %4229 = vmatpush1.bf16.msra.mxu1 %v6149_v11  ;;  %v6235_v6 = vld [vmem:[#allocation2 + $0xe0c] ss:$48 sps:$4 sm:$0xff]   ;;  %v6230_v11 = vld [vmem:[#allocation2 + $0xe00] ss:$48 sps:$4 sm:$0xff]  }
 0x204   :  { %4107 = vmatprep.subr.bf16.mxu0 %v6154_v33  ;;  %4230 = vmatprep.subr.bf16.mxu1 %v6157_v35  ;;  %v6233_v33 = vld [vmem:[#allocation2 + $0xe08] ss:$48 sps:$4 sm:$0xff]   ;;  %v6238_v35 = vld [vmem:[#allocation2 + $0xe64] ss:$48 sps:$4 sm:$0xff]  }
 0x207   :  { %4108 = vmatpush1.bf16.msra.mxu0 %v6152_v9  ;;  %4231 = vmatpush1.bf16.msra.mxu1 %v6155_v38  ;;  %v6241_v9 = vld [vmem:[#allocation2 + $0xe6c] ss:$48 sps:$4 sm:$0xff]  }
 0x208   :  { %4109 = vmatprep.subr.bf16.mxu0 %v6160_v39  ;;  %4232 = vmatprep.subr.bf16.mxu1 %v6163_v40 }
 0x20b   :  { %4110 = vmatpush1.bf16.msra.mxu0 %v6158_v36  ;;  %4233 = vmatpush1.bf16.msra.mxu1 %v6161_v41 }
 0x20c   :  { %4111 = vmatprep.subr.bf16.mxu0 %v6166_v42  ;;  %4234 = vmatprep.subr.bf16.mxu1 %v6169_v44  ;;  %v6236_v42 = vld [vmem:[#allocation2 + $0xe60] ss:$48 sps:$4 sm:$0xff]   ;;  %v6239_v44 = vld [vmem:[#allocation2 + $0xe68] ss:$48 sps:$4 sm:$0xff]  }
 0x20f   :  { %4112 = vmatpush1.bf16.msra.mxu0 %v6164_v45  ;;  %4235 = vmatpush1.bf16.msra.mxu1 %v6167_v46  ;;  %v6244_v46 = vld [vmem:[#allocation2 + $0xec4] ss:$48 sps:$4 sm:$0xff]  }
 0x210   :  { %4113 = vmatprep.subr.bf16.mxu0 %v6172_v5  ;;  %4236 = vmatprep.subr.bf16.mxu1 %v6175_v60  ;;  %v6247_v5 = vld [vmem:[#allocation2 + $0xecc] ss:$48 sps:$4 sm:$0xff]   ;;  %v6242_v60 = vld [vmem:[#allocation2 + $0xec0] ss:$48 sps:$4 sm:$0xff]  }
 0x213   :  { %4114 = vmatpush1.bf16.msra.mxu0 %v6170_v47  ;;  %4237 = vmatpush1.bf16.msra.mxu1 %v6173_v7  ;;  %v6245_v47 = vld [vmem:[#allocation2 + $0xec8] ss:$48 sps:$4 sm:$0xff]   ;;  %v6253_v7 = vld [vmem:[#allocation2 + $0xf2c] ss:$48 sps:$4 sm:$0xff]  }
 0x214   :  { %4115 = vmatprep.subr.bf16.mxu0 %v6178_v48  ;;  %4238 = vmatprep.subr.bf16.mxu1 %v6181_v50  ;;  %v6251_v48 = vld [vmem:[#allocation2 + $0xf28] ss:$48 sps:$4 sm:$0xff]   ;;  %v6256_v50 = vld [vmem:[#allocation2 + $0xf84] ss:$48 sps:$4 sm:$0xff]  }
 0x217   :  { %4116 = vmatpush1.bf16.msra.mxu0 %v6176_v51  ;;  %4239 = vmatpush1.bf16.msra.mxu1 %v6179_v52  ;;  %v6259_v51 = vld [vmem:[#allocation2 + $0xf8c] ss:$48 sps:$4 sm:$0xff]   ;;  %v6254_v52 = vld [vmem:[#allocation2 + $0xf80] ss:$48 sps:$4 sm:$0xff]  }
 0x218   :  { %4117 = vmatprep.subr.bf16.mxu0 %v6184_v53  ;;  %4240 = vmatprep.subr.bf16.mxu1 %v6187_v56  ;;  %v6257_v53 = vld [vmem:[#allocation2 + $0xf88] ss:$48 sps:$4 sm:$0xff]   ;;  %v6262_v56 = vld [vmem:[#allocation2 + $0xfe4] ss:$48 sps:$4 sm:$0xff]  }
 0x21b   :  { %4118 = vmatpush1.bf16.msra.mxu0 %v6182_v59  ;;  %4241 = vmatpush1.bf16.msra.mxu1 %v6185_v61  ;;  %v6265_v59 = vld [vmem:[#allocation2 + $0xfec] ss:$48 sps:$4 sm:$0xff]   ;;  %v6260_v61 = vld [vmem:[#allocation2 + $0xfe0] ss:$48 sps:$4 sm:$0xff]  }
 0x21c   :  { %4119 = vmatprep.subr.bf16.mxu0 %v6190_v62  ;;  %4242 = vmatprep.subr.bf16.mxu1 %v6193_v63  ;;  %v6263_v62 = vld [vmem:[#allocation2 + $0xfe8] ss:$48 sps:$4 sm:$0xff]   ;;  %v6268_v63 = vld [vmem:[#allocation2 + $0x1044] ss:$48 sps:$4 sm:$0xff]  }
 0x21f   :  { %4120 = vmatpush1.bf16.msra.mxu0 %v6188_v0  ;;  %4243 = vmatpush1.bf16.msra.mxu1 %v6191_v1  ;;  %v6271_v0 = vld [vmem:[#allocation2 + $0x104c] ss:$48 sps:$4 sm:$0xff]   ;;  %v6266_v1 = vld [vmem:[#allocation2 + $0x1040] ss:$48 sps:$4 sm:$0xff]  }
 0x220   :  { %4121 = vmatprep.subr.bf16.mxu0 %v6196_v15  ;;  %4244 = vmatprep.subr.bf16.mxu1 %v6199_v2  ;;  %v6269_v15 = vld [vmem:[#allocation2 + $0x1048] ss:$48 sps:$4 sm:$0xff]   ;;  %v6274_v2 = vld [vmem:[#allocation2 + $0x10a4] ss:$48 sps:$4 sm:$0xff]  }
 0x223   :  { %4122 = vmatpush1.bf16.msra.mxu0 %v6194_v3  ;;  %4245 = vmatpush1.bf16.msra.mxu1 %v6197_v34  ;;  %v6277_v3 = vld [vmem:[#allocation2 + $0x10ac] ss:$48 sps:$4 sm:$0xff]   ;;  %v6272_v34 = vld [vmem:[#allocation2 + $0x10a0] ss:$48 sps:$4 sm:$0xff]  }
 0x224   :  { %4132 = vmatprep.subr.bf16.mxu0 %v6202_v4  ;;  %4255 = vmatprep.subr.bf16.mxu1 %v6205_v37  ;;  %v6275_v4 = vld [vmem:[#allocation2 + $0x10a8] ss:$48 sps:$4 sm:$0xff]   ;;  %v6280_v37 = vld [vmem:[#allocation2 + $0x1104] ss:$48 sps:$4 sm:$0xff]  }
 0x226   :  { %4124 = vmatmul.mubr.bf16.vlgmr.msra.gmra.mrb[24].mxu0 %v6445_v25  ;;  %4247 = vmatmul.mubr.bf16.vlgmr.msra.gmra.mrb[16].mxu1 %v6445_v25  ;;  %v6223_v25 = vld [vmem:[#allocation2 + $0xd4c] ss:$48 sps:$4 sm:$0xff]  }
 0x227   :  { %4133 = vmatpush1.bf16.msra.mxu0 %v6200_v20  ;;  %4256 = vmatpush1.bf16.msra.mxu1 %v6203_v8  ;;  %v6283_v20 = vld [vmem:[#allocation2 + $0x110c] ss:$48 sps:$4 sm:$0xff]   ;;  %v4304_v8 = vsub.s32 1, %v6410_v43 }
 0x228   :  { %4134 = vmatprep.subr.bf16.mxu0 %v6208_v10  ;;  %4257 = vmatprep.subr.bf16.mxu1 %v6211_v12  ;;  %v4334_v10 = vld [vmem:[%s6574_s1] sm:$0x3f] }
 0x229   :  { %4164 = vmatprep.mubr.bf16.mxu0 %v6437_v21  ;;  %4287 = vmatprep.mubr.bf16.mxu1 %v6437_v21  ;;  %v6227_v21 = vld [vmem:[#allocation2 + $0xda8] ss:$48 sps:$4 sm:$0xff]   ;;  %v6525_v12 = vld [vmem:[#allocation4] sm:$0x3f] }
 0x22b   :  { %4135 = vmatpush1.bf16.msra.mxu0 %v6206_v13  ;;  %4258 = vmatpush1.bf16.msra.mxu1 %v6209_v14  ;;  %v6278_v13 = vld [vmem:[#allocation2 + $0x1100] ss:$48 sps:$4 sm:$0xff]   ;;  %v6281_v14 = vld [vmem:[#allocation2 + $0x1108] ss:$48 sps:$4 sm:$0xff]  }
 0x22c   :  { %4136 = vmatprep.subr.bf16.mxu0 %v6214_v16  ;;  %4259 = vmatprep.subr.bf16.mxu1 %v6217_v17  ;;  %v4342_v16 = vcombine.high %v4334_v10, %v4334_v10  ;;  %v6286_v17 = vld [vmem:[#allocation2 + $0x1164] ss:$48 sps:$4 sm:$0xff]  }
 0x22f   :  { %4137 = vmatpush1.bf16.msra.mxu0 %v6212_v18  ;;  %4260 = vmatpush1.bf16.msra.mxu1 %v6215_v19  ;;  %v6289_v18 = vld [vmem:[#allocation2 + $0x116c] ss:$48 sps:$4 sm:$0xff]   ;;  %v4305_v19 = vrot.slane %v6525_v12, %v4304_v8 }
 0x230   :  { %4138 = vmatprep.subr.bf16.mxu0 %v6220_v22  ;;  %4261 = vmatprep.subr.bf16.mxu1 %v6223_v25  ;;  %v6284_v22 = vld [vmem:[#allocation2 + $0x1160] ss:$48 sps:$4 sm:$0xff]   ;;  %v6287_v25 = vld [vmem:[#allocation2 + $0x1168] ss:$48 sps:$4 sm:$0xff]  }
 0x233   :  { %4139 = vmatpush1.bf16.msra.mxu0 %v6218_v23  ;;  %4262 = vmatpush1.bf16.msra.mxu1 %v6221_v24  ;;  %v4349_v23 = vrot.slane %v4334_v10, %v6413_v49  ;;  %v6530_v24 = vrot.slane %v4342_v16, %v6413_v49 }
 0x234   :  { %4140 = vmatprep.subr.bf16.mxu0 %v6226_v26  ;;  %4263 = vmatprep.subr.bf16.mxu1 %v6229_v29  ;;  %v6292_v26 = vld [vmem:[#allocation2 + $0x11c4] ss:$48 sps:$4 sm:$0xff]   ;;  %v6295_v29 = vld [vmem:[#allocation2 + $0x11cc] ss:$48 sps:$4 sm:$0xff]  }
 0x237   :  { %4141 = vmatpush1.bf16.msra.mxu0 %v6224_v30  ;;  %4264 = vmatpush1.bf16.msra.mxu1 %v6227_v21  ;;  %v4300_v30 = vsub.s32 0, %v6410_v43  ;;  %v4329_v21 = vadd.f32 %v4305_v19, %v6497_v58 }
 0x238   :  { %4142 = vmatprep.subr.bf16.mxu0 %v6232_v31  ;;  %4265 = vmatprep.subr.bf16.mxu1 %v6235_v6  ;;  %v6290_v31 = vld [vmem:[#allocation2 + $0x11c0] ss:$48 sps:$4 sm:$0xff]   ;;  %v6293_v6 = vld [vmem:[#allocation2 + $0x11c8] ss:$48 sps:$4 sm:$0xff]  }
 0x239   :  { %v3838_v38 = vpop.f32.mrb[16].mxu0 }
 0x23a   :  { %v6516_v39 = vadd.f32 %v6489_v54, %v3838_v38  ;;  %v3840_v40 = vpop.f32.mrb[17].mxu0  ;;  %v6250_v54 = vld [vmem:[#allocation2 + $0xf24] ss:$48 sps:$4 sm:$0xff]   ;;  %v4336_v38 = vpack.c.bf16 %v4329_v21, %v4329_v21 }
 0x23b   :  { %v6519_v36 = vadd.f32 %v6494_v57, %v3840_v40  ;;  %v3842_v41 = vpop.f32.mrb[18].mxu0  ;;  %4143 = vmatpush1.bf16.msra.mxu0 %v6230_v11  ;;  %4266 = vmatpush1.bf16.msra.mxu1 %v6233_v33  ;;  %v6248_v57 = vld [vmem:[#allocation2 + $0xf20] ss:$48 sps:$4 sm:$0xff]   ;;  %v4312_v11 = vsub.s32 3, %v6410_v43  ;;  %v4357_v33 = vcombine.high %v4349_v23, %v4349_v23 }
 0x23c   :  { %v3843_v45 = vpop.f32.mrb[19].mxu0  ;;  %4144 = vmatprep.subr.bf16.mxu0 %v6238_v35  ;;  %4267 = vmatprep.subr.bf16.mxu1 %v6241_v9  ;;  %v4358_v35 = vcombine.high %v6530_v24, %v6530_v24  ;;  %v4301_v9 = vrot.slane %v6525_v12, %v4300_v30 }
 0x23d   :  { %v4313_v40 = vrot.slane %v6525_v12, %v4312_v11  ;;  %v4379_v58 = vrot.slane %v4357_v33, %v6413_v49  ;;  %v4528_v33 = vld [vmem:[%s6577_s4] sm:$0x3] }
 0x23e   :  { %v4386_v41 = vrot.slane %v4358_v35, %v6413_v49  ;;  %vm4529_vm2 = vcmp.ge.f32.partialorder %v4528_v33, 0.1 }
 0x23f   :  { %4145 = vmatpush1.bf16.msra.mxu0 %v6236_v42  ;;  %4268 = vmatpush1.bf16.msra.mxu1 %v6239_v44  ;;  %v4328_v42 = vadd.f32 %v4301_v9, %v6492_v55  ;;  %v4308_v44 = vsub.s32 2, %v6410_v43  ;;  %v4331_v45 = vadd.f32 %v4313_v40, %v6509_v32  ;;  %v4365_v55 = vrot.slane %v4349_v23, %v6413_v49 }
 0x240   :  { %4146 = vmatprep.subr.bf16.mxu0 %v6244_v46  ;;  %4269 = vmatprep.subr.bf16.mxu1 %v6247_v5  ;;  %v4320_v32 = vsub.s32 5, %v6410_v43 }
 0x241   :  { %v4335_v46 = vpack.c.bf16 %v4328_v42, %v4328_v42  ;;  %v4309_v5 = vrot.slane %v6525_v12, %v4308_v44 }
 0x243   :  { %4147 = vmatpush1.bf16.msra.mxu0 %v6242_v60  ;;  %4270 = vmatpush1.bf16.msra.mxu1 %v6245_v47  ;;  %v4338_v60 = vpack.c.bf16 %v4331_v45, %v4331_v45  ;;  %v4330_v47 = vadd.f32 %v4309_v5, %v6506_v28 }
 0x244   :  { %4148 = vmatprep.subr.bf16.mxu0 %v6250_v54  ;;  %4271 = vmatprep.subr.bf16.mxu1 %v6253_v7  ;;  %v4388_v54 = vcombine.high %v4379_v58, %v4379_v58 }
 0x245   :  { %v4337_v7 = vpack.c.bf16 %v4330_v47, %v4330_v47 }
 0x247   :  { %4149 = vmatpush1.bf16.msra.mxu0 %v6248_v57  ;;  %4272 = vmatpush1.bf16.msra.mxu1 %v6251_v48 }
 0x248   :  { %4150 = vmatprep.subr.bf16.mxu0 %v6256_v50  ;;  %4273 = vmatprep.subr.bf16.mxu1 %v6259_v51  ;;  %v4321_v51 = vrot.slane %v6525_v12, %v4320_v32 }
 0x24b   :  { %4151 = vmatpush1.bf16.msra.mxu0 %v6254_v52  ;;  %4274 = vmatpush1.bf16.msra.mxu1 %v6257_v53 }
 0x24c   :  { %4152 = vmatprep.subr.bf16.mxu0 %v6262_v56  ;;  %4275 = vmatprep.subr.bf16.mxu1 %v6265_v59 }
 0x24f   :  { %4153 = vmatpush1.bf16.msra.mxu0 %v6260_v61  ;;  %4276 = vmatpush1.bf16.msra.mxu1 %v6263_v62  ;;  %v4387_v62 = vcombine.high %v4365_v55, %v4365_v55 }
 0x250   :  { %4154 = vmatprep.subr.bf16.mxu0 %v6268_v63  ;;  %4277 = vmatprep.subr.bf16.mxu1 %v6271_v0 }
 0x253   :  { %4155 = vmatpush1.bf16.msra.mxu0 %v6266_v1  ;;  %4278 = vmatpush1.bf16.msra.mxu1 %v6269_v15 }
 0x254   :  { %4156 = vmatprep.subr.bf16.mxu0 %v6274_v2  ;;  %4279 = vmatprep.subr.bf16.mxu1 %v6277_v3 }
 0x257   :  { %4157 = vmatpush1.bf16.msra.mxu0 %v6272_v34  ;;  %4280 = vmatpush1.bf16.msra.mxu1 %v6275_v4 }
 0x258   :  { %4158 = vmatprep.subr.bf16.mxu0 %v6280_v37  ;;  %4281 = vmatprep.subr.bf16.mxu1 %v6283_v20 }
 0x25b   :  { %4159 = vmatpush1.bf16.msra.mxu0 %v6278_v13  ;;  %4282 = vmatpush1.bf16.msra.mxu1 %v6281_v14 }
 0x25c   :  { %4160 = vmatprep.subr.bf16.mxu0 %v6286_v17  ;;  %4283 = vmatprep.subr.bf16.mxu1 %v6289_v18 }
 0x25f   :  { %4161 = vmatpush1.bf16.msra.mxu0 %v6284_v22  ;;  %4284 = vmatpush1.bf16.msra.mxu1 %v6287_v25 }
 0x260   :  { %4162 = vmatprep.subr.bf16.mxu0 %v6292_v26  ;;  %4285 = vmatprep.subr.bf16.mxu1 %v6295_v29 }
 0x263   :  { %4163 = vmatpush1.bf16.msra.mxu0 %v6290_v31  ;;  %4286 = vmatpush1.bf16.msra.mxu1 %v6293_v6  ;;  %v6354_v6 = vmov 0.0  }
 0x264   :  { %4395 = vmatprep.subr.bf16.mxu1 %v4336_v38 }
 0x266   :  { %4165 = vmatmul.mubr.bf16.vlgmr.msra.gmra.mrb[24].mxu0 %v6449_v27  ;;  %4288 = vmatmul.mubr.bf16.vlgmr.msra.gmra.mrb[16].mxu1 %v6449_v27  ;;  %v4316_v27 = vsub.s32 4, %v6410_v43 }
 0x267   :  { %4427 = vmatprep.mubr.bf16.mxu1 %v4379_v58  ;;  %4507 = vmatprep.mubr.bf16.mxu0 %v4386_v41  ;;  %v6355_v58 = vmov 1983009808  }
 0x268   :  { %v4317_v57 = vrot.slane %v6525_v12, %v4316_v27  ;;  %v4777_v41 = vunpack.c.l.s4 %v6355_v58 }
 0x26a   :  { %v4778_v44 = vunpack.c.0.s8 %v4777_v41 }
 0x26c   :  { %4396 = vmatpush1.bf16.xpose.msra.mxu1 %v4335_v46  ;;  %v4781_v5 = vsub.s32 %v4778_v44, %v6410_v43 }
 0x26d   :  { %4435 = vmatprep.subr.bf16.mxu1 %v4338_v60 }
 0x273   :  { %4428 = vmatmul.mubr.bf16.vlgmr.msra.gmra.mrb[20].mxu1 %v4365_v55 }
 0x274   :  { %4436 = vmatpush1.bf16.xpose.msra.mxu1 %v4337_v7  ;;  %4467 = vmatprep.mubr.bf16.mxu1 %v4388_v54 }
 0x279   :  { %v3920_v48 = vpop.f32.mrb[20].mxu0  ;;  %v4043_v50 = vpop.f32.mrb[12].mxu1 }
 0x27a   :  { %v3921_v52 = vadd.f32 %v3920_v48, %v6516_v39  ;;  %v3922_v28 = vpop.f32.mrb[21].mxu0  ;;  %v4045_v53 = vpop.f32.mrb[13].mxu1  ;;  %v4372_v39 = vrot.slane %v6530_v24, %v6413_v49 }
 0x27b   :  { %v3923_v56 = vadd.f32 %v3922_v28, %v6519_v36  ;;  %v3924_v59 = vpop.f32.mrb[22].mxu0  ;;  %v4047_v61 = vpop.f32.mrb[14].mxu1 }
 0x27c   :  { %v4332_v63 = vadd.f32 %v4317_v57, %v3921_v52  ;;  %v3925_v0 = vpop.f32.mrb[23].mxu0  ;;  %v4048_v1 = vpop.f32.mrb[15].mxu1 }
 0x27d   :  { %v4333_v15 = vadd.f32 %v4321_v51, %v3923_v56 }
 0x27e   :  { %v4339_v3 = vpack.c.bf16 %v4332_v63, %v4332_v63 }
 0x27f   :  { %v4340_v2 = vpack.c.bf16 %v4333_v15, %v4333_v15  ;;  %4468 = vmatmul.mubr.bf16.vlgmr.msra.gmra.mrb[20].mxu1 %v4387_v62 }
 0x281   :  { %4475 = vmatprep.subr.bf16.mxu0 %v4340_v2 }
 0x282   :  { %4476 = vmatpush1.bf16.xpose.msra.mxu0 %v4339_v3 }
 0x283   :  { %5385 = vmatprep.subr.msk.mxu0 %vm4536_vm0, %v4045_v53 }
 0x289   :  { %4508 = vmatmul.mubr.bf16.vlgmr.msra.gmra.mrb[28].mxu0 %v4372_v39 }
 0x28a   :  { %5386 = vmatpush1.msk.msra.mxu0 %vm4536_vm0, %v4043_v50  ;;  %4619 = vmatprep.mubr.f32.mxu0 %v6354_v6 }
 0x339   :  { %v4166_v36 = vpop.f32.mrb[24].mxu0  ;;  %v4289_v34 = vpop.f32.mrb[16].mxu1 }
 0x33a   :  { %v4168_v4 = vpop.f32.mrb[25].mxu0  ;;  %v4291_v37 = vpop.f32.mrb[17].mxu1 }
 0x33b   :  { %v4170_v20 = vpop.f32.mrb[26].mxu0  ;;  %v4293_v8 = vpop.f32.mrb[18].mxu1  ;;  %5388 = vmatprep.subr.msk.mxu0 %vm4536_vm0, %v4168_v4 }
 0x33c   :  { %v4171_v10 = vpop.f32.mrb[27].mxu0  ;;  %v4294_v12 = vpop.f32.mrb[19].mxu1 }
 0x352   :  { %v4469_v13 = vpop.f32.mrb[20].mxu1 }
 0x353   :  { %v4471_v14 = vpop.f32.mrb[21].mxu1 }
 0x354   :  { %v4472_v16 = vpop.f32.mrb[22].mxu1 }
 0x355   :  { %v4473_v17 = vpop.f32.mrb[23].mxu1 }
 0x35c   :  { %v4509_v18 = vpop.f32.mrb[28].mxu0 }
 0x35d   :  { %v5395_v19 = vadd.f32 %v4509_v18, %v4469_v13  ;;  %v4511_v49 = vpop.f32.mrb[29].mxu0 }
 0x35e   :  { %v4512_v22 = vpop.f32.mrb[30].mxu0 }
 0x35f   :  { %v4515_v25 = vmul.f32 16.0, %v5395_v19  ;;  %v4513_v23 = vpop.f32.mrb[31].mxu0 }
 0x361   :  { %v4517_v24 = vsel %vm4516_vm1, %v4515_v25, -inf }
 0x362   :  { %4518 = vmax.xlane.f32.xlu0 %v4517_v24 }
 0x3ef   :  { %v4519_v26 = vpop.xlane.xlu0 %4518 }
 0x3f0   :  { %v4520_v29 = vsub.f32 %v4515_v25, %v4519_v26 }
 0x3f2   :  { %v4521_v30 = vmul.f32 1.442695, %v4520_v29 }
 0x3f4   :  { %6297 = vpow2.f32 %v4521_v30 }
 0x3fe   :  { %v6298_v21 = vpop.eup %6297 }
 0x3ff   :  { %v4523_v31 = vsel %vm4516_vm1, %v6298_v21, 0.0 }
 0x400   :  { %4524 = vadd.xlane.f32.xlu0 %v4523_v31 }
 0x48d   :  { %v4525_v11 = vpop.xlane.xlu0 %4524 }
 0x48e   :  { %6299 = vrcp.f32 %v4525_v11 }
 0x498   :  { %v6300_v35 = vpop.eup %6299 }
 0x499   :  { %v4527_v9 = vmul.f32 %v6300_v35, %v6298_v21 }
 0x49b   :  { %v4530_v38 = vmul.f32 1.1111112, %v4527_v9 }
 0x49d   :  { %v4531_v40 = vsel %vm4529_vm2, %v4530_v38, 0.0 }
 0x49e   :  { %5387 = vmatmul.mubr.msk.f32.vlgmr.msra.gmra.mrb[32].mxu0 %vm4532_vm3, %v4531_v40 }
 0x49f   :  { %5389 = vmatpush1.msk.msra.mxu0 %vm4536_vm0, %v4166_v36  ;;  %4690 = vmatprep.mubr.f32.mxu0 %v6354_v6 }
 0x4a0   :  { %5391 = vmatprep.subr.msk.mxu0 %vm4536_vm0, %v4291_v37 }
 0x4a2   :  { %5390 = vmatmul.mubr.msk.f32.vlgmr.msra.gmra.mrb[34].mxu0 %vm4532_vm3, %v4531_v40 }
 0x4a3   :  { %5392 = vmatpush1.msk.msra.mxu0 %vm4536_vm0, %v4289_v34  ;;  %4761 = vmatprep.mubr.f32.mxu0 %v6354_v6 }
 0x4a6   :  { %5393 = vmatmul.mubr.msk.f32.vlgmr.msra.gmra.mrb[36].mxu0 %vm4532_vm3, %v4531_v40 }
 0x571   :  { %v4621_v42 = vpop.f32.mrb[32].mxu0 }
 0x572   :  { %v4623_v45 = vpop.f32.mrb[33].mxu0 }
 0x573   :  { %v4774_v46 = vcombine.low %v4621_v42, %v4623_v45 }
 0x575   :  { %v4692_v60 = vpop.f32.mrb[34].mxu0  ;;  %v4782_v54 = vrot.slane %v4774_v46, %v4781_v5 }
 0x576   :  { %v4694_v47 = vpop.f32.mrb[35].mxu0 }
 0x577   :  { %v4775_v55 = vcombine.low %v4692_v60, %v4694_v47 }
 0x579   :  { %v4789_v7 = vrot.slane %v4775_v55, %v4781_v5  ;;  %v4763_v27 = vpop.f32.mrb[36].mxu0 }
 0x57a   :  { %v4765_v32 = vpop.f32.mrb[37].mxu0 }
 0x57b   :  { %v4790_v57 = vcombine.low %v4782_v54, %v4789_v7  ;;  %v4791_v48 = vcombine.low %v4763_v27, %v4765_v32 }
 0x57d   :  { %4801 = vst [vmem:[%s6578_s5] sm:$0xff] %v4790_v57  ;;  %5394 = vst.sshfl [vmem:[%s6578_s5 + $0x8] sm:$0x33 pattern:$0x76325410] %v4791_v48 }
 0x57e   :  { %4807 = vsyncpa [#allocation3], 1 }
 0x57f   :  { %4808 = vsyncpa [#allocation5], 1 }

</bundles_post_ra>
